<compile_context>
chip_gen: v7x
topology: tpu7x:2x2x1
jax: 0.10.0
libtpu: 0.0.40
codegen_flags: <defaults>
</compile_context>

<pallas_src>
import functools

import numpy as np
import jax
import jax.numpy as jnp
from jax import lax
from jax.experimental import pallas as pl
from jax.experimental.pallas import tpu as pltpu


IMAGE_EMBED_DIM = 32   # stand-in for convnext_small's 768
GRAPH_EMBED_DIM = 16
HIDDEN_DIM = 32        # unused in forward (matches reference)
GCN_HIDDEN = 64        # hardcoded in GCNGraphModel
GCN_INPUT = 3          # hardcoded in GCNGraphModel
LANE = 128             # lane-dense output width
EPS = 1e-6


# ---------------------------------------------------------------------------
# Small helpers (used inside kernels)
# ---------------------------------------------------------------------------

def _round_up(x, m):
    return ((x + m - 1) // m) * m


def _dot(a, b):
    """bf16-in / f32-accumulate MXU matmul (elementwise math stays f32)."""
    return jnp.dot(a.astype(jnp.bfloat16), b.astype(jnp.bfloat16),
                   preferred_element_type=jnp.float32)


def _layernorm(x, g, b, eps=EPS):
    mu = jnp.mean(x, axis=-1, keepdims=True)
    xc = x - mu
    var = jnp.mean(xc * xc, axis=-1, keepdims=True)
    return xc * lax.rsqrt(var + eps) * g + b


def _gelu(x):
    # TODO(synk): tanh-approx GELU; PyTorch nn.GELU() is exact-erf (delta < 1e-3).
    return 0.5 * x * (1.0 + jnp.tanh(
        0.7978845608028654 * (x + 0.044715 * x * x * x)))


def _full_spec(a):
    nd = a.ndim
    return pl.BlockSpec(a.shape, lambda *_: (0,) * nd)


# ---------------------------------------------------------------------------
# Depthwise-7x7 shift matrices (constant per spatial size; zero pad folded in)
# ---------------------------------------------------------------------------

@functools.lru_cache(maxsize=None)
def _dw_shift_matrix_np(Hs, Ws):
    L = Hs * Ws
    T = np.zeros((49, L, L), np.float32)
    for dy in range(-3, 4):
        for dx in range(-3, 4):
            k = (dy + 3) * 7 + (dx + 3)
            for pi in range(Hs):
                for pj in range(Ws):
                    qi, qj = pi + dy, pj + dx
                    if 0 <= qi < Hs and 0 <= qj < Ws:
                        T[k, pi * Ws + pj, qi * Ws + qj] = 1.0
    return T.reshape(49 * L, L)


def _dw_shift_matrix(Hs, Ws):
    return jnp.asarray(_dw_shift_matrix_np(Hs, Ws))


# ---------------------------------------------------------------------------
# Fused image-branch kernel: ConvNeXt-style backbone + image_fc in one call
# ---------------------------------------------------------------------------

def _image_kernel(L, D,
                  patch_ref, t_ref,
                  stem_w_ref, stem_b_ref, stem_g_ref, stem_bb_ref,
                  dw_w_ref, dw_b_ref, blk_g_ref, blk_b_ref,
                  pw1_w_ref, pw1_b_ref, pw2_w_ref, pw2_b_ref, ls_ref,
                  head_g_ref, head_b_ref, fc_w_ref, fc_b_ref,
                  o_ref):
    # --- patchify stem (4x4 stride-4 conv as matmul) + LayerNorm ---
    x = _dot(patch_ref[...], stem_w_ref[...]) + stem_b_ref[...]      # [L, D]
    x = _layernorm(x, stem_g_ref[...], stem_bb_ref[...])

    # --- ConvNeXt block: depthwise 7x7 as one fat shift-matrix matmul ---
    y_all = _dot(t_ref[...], x)                                      # [49*L, D]
    acc = jnp.zeros((L, D), jnp.float32)
    for k in range(49):                                              # unrolled taps
        acc = acc + y_all[k * L:(k + 1) * L, :] * dw_w_ref[k:k + 1, :]
    y = acc + dw_b_ref[...]
    y = _layernorm(y, blk_g_ref[...], blk_b_ref[...])
    y = _gelu(_dot(y, pw1_w_ref[...]) + pw1_b_ref[...])              # [L, 4D]
    y = _dot(y, pw2_w_ref[...]) + pw2_b_ref[...]                     # [L, D]
    x = x + ls_ref[...] * y                                          # layer scale + skip

    # --- head: global avg pool + LayerNorm + Identity(classifier[2]) + image_fc ---
    pooled = jnp.mean(x, axis=0, keepdims=True)                      # [1, D]
    feat = _layernorm(pooled, head_g_ref[...], head_b_ref[...])
    emb = _dot(feat, fc_w_ref[...]) + fc_b_ref[...]                  # [1, LANE] lane-dense
    o_ref[...] = emb.astype(o_ref.dtype)


def image_forward_fused(p, image):
    """image: [B, H, W, 3] NHWC -> [B, GRAPH_EMBED_DIM] (backbone + image_fc)."""
    B, H, W, Cin = image.shape
    D = IMAGE_EMBED_DIM
    Hs, Ws = H // 4, W // 4
    L = Hs * Ws
    KP = 4 * 4 * Cin

    # glue: patchify (pure reshape/transpose)
    patches = image.reshape(B, Hs, 4, Ws, 4, Cin).transpose(0, 1, 3, 2, 4, 5)
    patches = patches.reshape(B, L, KP)

    # glue: constant shift matrices for the zero-padded depthwise 7x7 conv
    tmat = _dw_shift_matrix(Hs, Ws)                                  # [49*L, L]

    # glue: lane-pad image_fc so the kernel's only HBM store is 128-wide
    fc_w = jnp.pad(p["fc_w"], ((0, 0), (0, LANE - GRAPH_EMBED_DIM)))
    fc_b = jnp.pad(p["fc_b"], ((0, 0), (0, LANE - GRAPH_EMBED_DIM)))

    ins = [patches, tmat,
           p["stem_w"], p["stem_b"], p["stem_ln_g"], p["stem_ln_b"],
           p["dw_w"], p["dw_b"], p["blk_ln_g"], p["blk_ln_b"],
           p["pw1_w"], p["pw1_b"], p["pw2_w"], p["pw2_b"], p["ls_gamma"],
           p["head_ln_g"], p["head_ln_b"], fc_w, fc_b]

    in_specs = ([pl.BlockSpec((None, L, KP), lambda i: (i, 0, 0))] +
                [_full_spec(a) for a in ins[1:]])

    out = pl.pallas_call(
        functools.partial(_image_kernel, L, D),
        out_shape=jax.ShapeDtypeStruct((B, 1, LANE), jnp.float32),
        grid=(B,),
        in_specs=in_specs,
        out_specs=pl.BlockSpec((None, 1, LANE), lambda i: (i, 0, 0)),
        compiler_params=pltpu.CompilerParams(
            dimension_semantics=("parallel",)),        # one image per TC on v7x
    )(*ins)
    return out[:, 0, :GRAPH_EMBED_DIM]                               # [B, 16]


# ---------------------------------------------------------------------------
# Fused GCN-branch kernel: relu(GCNConv) -> GCNConv -> global_mean_pool
# ---------------------------------------------------------------------------

def _gcn_kernel(x_ref, a_ref, w1_ref, b1_ref, w2_ref, b2_ref, pool_ref, o_ref):
    a = a_ref[...]
    xw = _dot(x_ref[...], w1_ref[...])                                # [Np, 64]
    h = jnp.maximum(_dot(a, xw) + b1_ref[...], 0.0)                   # ReLU(GCNConv1)
    hw = _dot(h, w2_ref[...])                                         # [Np, LANE]
    h2 = _dot(a, hw) + b2_ref[...]                                    # GCNConv2
    o_ref[...] = _dot(pool_ref[...], h2).astype(o_ref.dtype)          # mean pool


def gcn_forward_fused(p, node_x, a_norm, pool_mat):
    """node_x:[N,3], a_norm:[N,N], pool_mat:[G,N] -> [G, GRAPH_EMBED_DIM]."""
    N, Fin = node_x.shape
    G = pool_mat.shape[0]
    Np = max(_round_up(N, 8), 8)
    Gp = max(_round_up(G, 8), 8)
    Fp = max(_round_up(Fin, 8), 8)

    # glue: zero-pad rows/cols to (8,128)-friendly shapes; math is unchanged
    # because padded rows/cols of A_norm, pool_mat and W1 are all zero.
    x_p = jnp.pad(node_x, ((0, Np - N), (0, Fp - Fin)))
    a_p = jnp.pad(a_norm, ((0, Np - N), (0, Np - N)))
    pool_p = jnp.pad(pool_mat, ((0, Gp - G), (0, Np - N)))
    w1_p = jnp.pad(p["gcn1_w"], ((0, Fp - Fin), (0, 0)))
    w2_p = jnp.pad(p["gcn2_w"], ((0, 0), (0, LANE - GRAPH_EMBED_DIM)))
    b2_p = jnp.pad(p["gcn2_b"], ((0, 0), (0, LANE - GRAPH_EMBED_DIM)))

    ins = [x_p, a_p, w1_p, p["gcn1_b"], w2_p, b2_p, pool_p]
    out = pl.pallas_call(
        _gcn_kernel,
        out_shape=jax.ShapeDtypeStruct((Gp, LANE), jnp.float32),
        grid=(1,),
        in_specs=[_full_spec(a) for a in ins],
        out_specs=pl.BlockSpec((Gp, LANE), lambda i: (0, 0)),
        compiler_params=pltpu.CompilerParams(
            dimension_semantics=("arbitrary",)),
    )(*ins)
    return out[:G, :GRAPH_EMBED_DIM]                                  # [G, 16]


# ---------------------------------------------------------------------------
# Model params + forward (glue composes the two fused Pallas kernels)
# ---------------------------------------------------------------------------

def init_params(key):
    ks = jax.random.split(key, 12)
    n = lambda k, s, sc=0.1: jax.random.normal(k, s, jnp.float32) * sc
    D, E = IMAGE_EMBED_DIM, 4 * IMAGE_EMBED_DIM
    return {
        # image backbone (ConvNeXt-style)
        "stem_w": n(ks[0], (4 * 4 * 3, D)),
        "stem_b": jnp.zeros((1, D), jnp.float32),
        "stem_ln_g": jnp.ones((1, D), jnp.float32),
        "stem_ln_b": jnp.zeros((1, D), jnp.float32),
        "dw_w": n(ks[1], (49, D)),
        "dw_b": jnp.zeros((1, D), jnp.float32),
        "blk_ln_g": jnp.ones((1, D), jnp.float32),
        "blk_ln_b": jnp.zeros((1, D), jnp.float32),
        "pw1_w": n(ks[2], (D, E)),
        "pw1_b": jnp.zeros((1, E), jnp.float32),
        "pw2_w": n(ks[3], (E, D)),
        "pw2_b": jnp.zeros((1, D), jnp.float32),
        "ls_gamma": jnp.full((1, D), 1e-6, jnp.float32),
        "head_ln_g": jnp.ones((1, D), jnp.float32),
        "head_ln_b": jnp.zeros((1, D), jnp.float32),
        # image_fc: Linear(image_embed_dim, graph_embed_dim)
        "fc_w": n(ks[4], (D, GRAPH_EMBED_DIM)),
        "fc_b": n(ks[5], (1, GRAPH_EMBED_DIM), 0.01),
        # GCN layers
        "gcn1_w": n(ks[6], (GCN_INPUT, GCN_HIDDEN)),
        "gcn1_b": n(ks[7], (1, GCN_HIDDEN), 0.01),
        "gcn2_w": n(ks[8], (GCN_HIDDEN, GRAPH_EMBED_DIM)),
        "gcn2_b": n(ks[9], (1, GRAPH_EMBED_DIM), 0.01),
    }


def multimodal_forward(p, image, node_x, a_norm, pool_mat):
    img_emb = image_forward_fused(p, image)                # [B, 16]
    graph_emb = gcn_forward_fused(p, node_x, a_norm, pool_mat)   # [G, 16]
    return img_emb, graph_emb


# ---------------------------------------------------------------------------
# Graph preprocessing glue (dense normalized adjacency + pooling matrix)
# ---------------------------------------------------------------------------

def build_graph_mats(edge_index, batch, num_nodes, num_graphs):
    src, dst = edge_index
    A = jnp.zeros((num_nodes, num_nodes), jnp.float32)
    A = A.at[src, dst].set(1.0)
    A = A.at[dst, src].set(1.0)
    A = A + jnp.eye(num_nodes, dtype=jnp.float32)          # add self loops
    deg = A.sum(axis=1)
    dinv = lax.rsqrt(deg)                                  # deg >= 1 (self loops)
    a_norm = A * dinv[:, None] * dinv[None, :]             # D^-1/2 A_hat D^-1/2
    onehot = (batch[None, :] == jnp.arange(num_graphs)[:, None]).astype(jnp.float32)
    pool_mat = onehot / jnp.maximum(onehot.sum(axis=1, keepdims=True), 1.0)
    return a_norm, pool_mat


if __name__ == "__main__":
    key = jax.random.PRNGKey(0)
    kp, ki, kx = jax.random.split(key, 3)

    params = init_params(kp)

    # image: batch=2, spatial 16x16, RGB (NHWC layout; PyTorch would be NCHW)
    image = jax.random.normal(ki, (2, 16, 16, 3), jnp.float32)

    # graph: 2 graphs x 10 nodes, 3 features, ring topology inside each graph
    num_graphs, nodes_per_graph = 2, 10
    num_nodes = num_graphs * nodes_per_graph
    node_x = jax.random.normal(kx, (num_nodes, GCN_INPUT), jnp.float32)
    src, dst = [], []
    for g in range(num_graphs):
        off = g * nodes_per_graph
        for i in range(nodes_per_graph):
            src.append(off + i)
            dst.append(off + (i + 1) % nodes_per_graph)
    edge_index = jnp.array([src, dst], jnp.int32)          # [2, 20]
    batch = jnp.repeat(jnp.arange(num_graphs), nodes_per_graph)

    a_norm, pool_mat = build_graph_mats(edge_index, batch, num_nodes, num_graphs)

    fwd = jax.jit(functools.partial(multimodal_forward, params))
    img_emb, graph_emb = fwd(image, node_x, a_norm, pool_mat)
    jax.block_until_ready((img_emb, graph_emb))

    assert img_emb.shape == (2, GRAPH_EMBED_DIM)
    assert graph_emb.shape == (num_graphs, GRAPH_EMBED_DIM)
    print("KERNEL_OK")
</pallas_src>

<mosaic_0001>
module attributes {stable_mosaic.version = 11 : i64} {
  func.func @_gcn_kernel(%arg0: i32, %arg1: memref<24x8xf32, #tpu.memory_space<vmem>>, %arg2: memref<24x24xf32, #tpu.memory_space<vmem>>, %arg3: memref<8x64xf32, #tpu.memory_space<vmem>>, %arg4: memref<1x64xf32, #tpu.memory_space<vmem>>, %arg5: memref<64x128xf32, #tpu.memory_space<vmem>>, %arg6: memref<1x128xf32, #tpu.memory_space<vmem>>, %arg7: memref<8x24xf32, #tpu.memory_space<vmem>>, %arg8: memref<8x128xf32, #tpu.memory_space<vmem>>) attributes {dimension_semantics = [#tpu.dimension_semantics<arbitrary>], iteration_bounds = array<i64: 1>, scalar_prefetch = 0 : i64, scratch_operands = 0 : i64, tpu.core_type = #tpu.core_type<tc>, window_params = [{pipeline_mode = #tpu.pipeline_mode<synchronous>, transform_indices = @transform_0, window_bounds = array<i64: 24, 8>}, {pipeline_mode = #tpu.pipeline_mode<synchronous>, transform_indices = @transform_1, window_bounds = array<i64: 24, 24>}, {pipeline_mode = #tpu.pipeline_mode<synchronous>, transform_indices = @transform_2, window_bounds = array<i64: 8, 64>}, {pipeline_mode = #tpu.pipeline_mode<synchronous>, transform_indices = @transform_3, window_bounds = array<i64: 1, 64>}, {pipeline_mode = #tpu.pipeline_mode<synchronous>, transform_indices = @transform_4, window_bounds = array<i64: 64, 128>}, {pipeline_mode = #tpu.pipeline_mode<synchronous>, transform_indices = @transform_5, window_bounds = array<i64: 1, 128>}, {pipeline_mode = #tpu.pipeline_mode<synchronous>, transform_indices = @transform_6, window_bounds = array<i64: 8, 24>}, {pipeline_mode = #tpu.pipeline_mode<synchronous>, transform_indices = @transform_7, window_bounds = array<i64: 8, 128>}]} {
    %c0 = arith.constant 0 : index
    %c0_0 = arith.constant 0 : index
    %0 = vector.load %arg2[%c0, %c0_0] : memref<24x24xf32, #tpu.memory_space<vmem>>, vector<24x24xf32>
    %c0_1 = arith.constant 0 : index
    %c0_2 = arith.constant 0 : index
    %1 = vector.load %arg1[%c0_1, %c0_2] : memref<24x8xf32, #tpu.memory_space<vmem>>, vector<24x8xf32>
    %c0_3 = arith.constant 0 : index
    %c0_4 = arith.constant 0 : index
    %2 = vector.load %arg3[%c0_3, %c0_4] : memref<8x64xf32, #tpu.memory_space<vmem>>, vector<8x64xf32>
    %3 = arith.truncf %1 : vector<24x8xf32> to vector<24x8xbf16>
    %4 = arith.truncf %2 : vector<8x64xf32> to vector<8x64xbf16>
    %cst = arith.constant dense<0.000000e+00> : vector<24x64xf32>
    %5 = tpu.matmul %3, %4, %cst {dimension_numbers = #tpu.dot_dimension_numbers<[1], [0], [0], [1], [0, 0, 1, 1], [], []>} : vector<24x8xbf16>, vector<8x64xbf16>, vector<24x64xf32> -> vector<24x64xf32>
    %6 = arith.truncf %0 : vector<24x24xf32> to vector<24x24xbf16>
    %7 = arith.truncf %5 : vector<24x64xf32> to vector<24x64xbf16>
    %cst_5 = arith.constant dense<0.000000e+00> : vector<24x64xf32>
    %8 = tpu.matmul %6, %7, %cst_5 {dimension_numbers = #tpu.dot_dimension_numbers<[1], [0], [0], [1], [0, 0, 1, 1], [], []>} : vector<24x24xbf16>, vector<24x64xbf16>, vector<24x64xf32> -> vector<24x64xf32>
    %c0_6 = arith.constant 0 : index
    %c0_7 = arith.constant 0 : index
    %9 = vector.load %arg4[%c0_6, %c0_7] : memref<1x64xf32, #tpu.memory_space<vmem>>, vector<1x64xf32>
    %10 = vector.broadcast %9 : vector<1x64xf32> to vector<24x64xf32>
    %11 = arith.addf %8, %10 : vector<24x64xf32>
    %cst_8 = arith.constant 0.000000e+00 : f32
    %12 = vector.broadcast %cst_8 : f32 to vector<24x64xf32>
    %13 = arith.maximumf %11, %12 : vector<24x64xf32>
    %c0_9 = arith.constant 0 : index
    %c0_10 = arith.constant 0 : index
    %14 = vector.load %arg5[%c0_9, %c0_10] : memref<64x128xf32, #tpu.memory_space<vmem>>, vector<64x128xf32>
    %15 = arith.truncf %13 : vector<24x64xf32> to vector<24x64xbf16>
    %16 = arith.truncf %14 : vector<64x128xf32> to vector<64x128xbf16>
    %cst_11 = arith.constant dense<0.000000e+00> : vector<24x128xf32>
    %17 = tpu.matmul %15, %16, %cst_11 {dimension_numbers = #tpu.dot_dimension_numbers<[1], [0], [0], [1], [0, 0, 1, 1], [], []>} : vector<24x64xbf16>, vector<64x128xbf16>, vector<24x128xf32> -> vector<24x128xf32>
    %18 = arith.truncf %0 : vector<24x24xf32> to vector<24x24xbf16>
    %19 = arith.truncf %17 : vector<24x128xf32> to vector<24x128xbf16>
    %cst_12 = arith.constant dense<0.000000e+00> : vector<24x128xf32>
    %20 = tpu.matmul %18, %19, %cst_12 {dimension_numbers = #tpu.dot_dimension_numbers<[1], [0], [0], [1], [0, 0, 1, 1], [], []>} : vector<24x24xbf16>, vector<24x128xbf16>, vector<24x128xf32> -> vector<24x128xf32>
    %c0_13 = arith.constant 0 : index
    %c0_14 = arith.constant 0 : index
    %21 = vector.load %arg6[%c0_13, %c0_14] : memref<1x128xf32, #tpu.memory_space<vmem>>, vector<1x128xf32>
    %22 = vector.broadcast %21 : vector<1x128xf32> to vector<24x128xf32>
    %23 = arith.addf %20, %22 : vector<24x128xf32>
    %c0_15 = arith.constant 0 : index
    %c0_16 = arith.constant 0 : index
    %24 = vector.load %arg7[%c0_15, %c0_16] : memref<8x24xf32, #tpu.memory_space<vmem>>, vector<8x24xf32>
    %25 = arith.truncf %24 : vector<8x24xf32> to vector<8x24xbf16>
    %26 = arith.truncf %23 : vector<24x128xf32> to vector<24x128xbf16>
    %cst_17 = arith.constant dense<0.000000e+00> : vector<8x128xf32>
    %27 = tpu.matmul %25, %26, %cst_17 {dimension_numbers = #tpu.dot_dimension_numbers<[1], [0], [0], [1], [0, 0, 1, 1], [], []>} : vector<8x24xbf16>, vector<24x128xbf16>, vector<8x128xf32> -> vector<8x128xf32>
    %c0_18 = arith.constant 0 : index
    %c0_19 = arith.constant 0 : index
    %28 = vector.load %arg8[%c0_18, %c0_19] : memref<8x128xf32, #tpu.memory_space<vmem>>, vector<8x128xf32>
    tpu.vector_store %arg8[%c0_18, %c0_19], %27 {strides = array<i32>} : memref<8x128xf32, #tpu.memory_space<vmem>>, vector<8x128xf32>,
    return
  }
  func.func @transform_0(%arg0: i32) -> (i32, i32) {
    %c0_i32 = arith.constant 0 : i32
    %c0_i32_0 = arith.constant 0 : i32
    %c0_i32_1 = arith.constant 0 : i32
    return %c0_i32, %c0_i32_0 : i32, i32
  }
  func.func @transform_1(%arg0: i32) -> (i32, i32) {
    %c0_i32 = arith.constant 0 : i32
    %c0_i32_0 = arith.constant 0 : i32
    %c0_i32_1 = arith.constant 0 : i32
    return %c0_i32, %c0_i32_0 : i32, i32
  }
  func.func @transform_2(%arg0: i32) -> (i32, i32) {
    %c0_i32 = arith.constant 0 : i32
    %c0_i32_0 = arith.constant 0 : i32
    %c0_i32_1 = arith.constant 0 : i32
    return %c0_i32, %c0_i32_0 : i32, i32
  }
  func.func @transform_3(%arg0: i32) -> (i32, i32) {
    %c0_i32 = arith.constant 0 : i32
    %c0_i32_0 = arith.constant 0 : i32
    %c0_i32_1 = arith.constant 0 : i32
    return %c0_i32, %c0_i32_0 : i32, i32
  }
  func.func @transform_4(%arg0: i32) -> (i32, i32) {
    %c0_i32 = arith.constant 0 : i32
    %c0_i32_0 = arith.constant 0 : i32
    %c0_i32_1 = arith.constant 0 : i32
    return %c0_i32, %c0_i32_0 : i32, i32
  }
  func.func @transform_5(%arg0: i32) -> (i32, i32) {
    %c0_i32 = arith.constant 0 : i32
    %c0_i32_0 = arith.constant 0 : i32
    %c0_i32_1 = arith.constant 0 : i32
    return %c0_i32, %c0_i32_0 : i32, i32
  }
  func.func @transform_6(%arg0: i32) -> (i32, i32) {
    %c0_i32 = arith.constant 0 : i32
    %c0_i32_0 = arith.constant 0 : i32
    %c0_i32_1 = arith.constant 0 : i32
    return %c0_i32, %c0_i32_0 : i32, i32
  }
  func.func @transform_7(%arg0: i32) -> (i32, i32) {
    %c0_i32 = arith.constant 0 : i32
    %c0_i32_0 = arith.constant 0 : i32
    %c0_i32_1 = arith.constant 0 : i32
    return %c0_i32, %c0_i32_0 : i32, i32
  }
}

module attributes {stable_mosaic.version = 11 : i64} {
  func.func @_image_kernel(%arg0: i32, %arg1: memref<1x16x48xf32, #tpu.memory_space<vmem>>, %arg2: memref<784x16xf32, #tpu.memory_space<vmem>>, %arg3: memref<48x32xf32, #tpu.memory_space<vmem>>, %arg4: memref<1x32xf32, #tpu.memory_space<vmem>>, %arg5: memref<1x32xf32, #tpu.memory_space<vmem>>, %arg6: memref<1x32xf32, #tpu.memory_space<vmem>>, %arg7: memref<49x32xf32, #tpu.memory_space<vmem>>, %arg8: memref<1x32xf32, #tpu.memory_space<vmem>>, %arg9: memref<1x32xf32, #tpu.memory_space<vmem>>, %arg10: memref<1x32xf32, #tpu.memory_space<vmem>>, %arg11: memref<32x128xf32, #tpu.memory_space<vmem>>, %arg12: memref<1x128xf32, #tpu.memory_space<vmem>>, %arg13: memref<128x32xf32, #tpu.memory_space<vmem>>, %arg14: memref<1x32xf32, #tpu.memory_space<vmem>>, %arg15: memref<1x32xf32, #tpu.memory_space<vmem>>, %arg16: memref<1x32xf32, #tpu.memory_space<vmem>>, %arg17: memref<1x32xf32, #tpu.memory_space<vmem>>, %arg18: memref<32x128xf32, #tpu.memory_space<vmem>>, %arg19: memref<1x128xf32, #tpu.memory_space<vmem>>, %arg20: memref<1x1x128xf32, #tpu.memory_space<vmem>>) attributes {dimension_semantics = [#tpu.dimension_semantics<parallel>], iteration_bounds = array<i64: 2>, scalar_prefetch = 0 : i64, scratch_operands = 0 : i64, tpu.core_type = #tpu.core_type<tc>, window_params = [{transform_indices = @transform_0, window_bounds = array<i64: 1, 16, 48>}, {pipeline_mode = #tpu.pipeline_mode<synchronous>, transform_indices = @transform_1, window_bounds = array<i64: 784, 16>}, {pipeline_mode = #tpu.pipeline_mode<synchronous>, transform_indices = @transform_2, window_bounds = array<i64: 48, 32>}, {pipeline_mode = #tpu.pipeline_mode<synchronous>, transform_indices = @transform_3, window_bounds = array<i64: 1, 32>}, {pipeline_mode = #tpu.pipeline_mode<synchronous>, transform_indices = @transform_4, window_bounds = array<i64: 1, 32>}, {pipeline_mode = #tpu.pipeline_mode<synchronous>, transform_indices = @transform_5, window_bounds = array<i64: 1, 32>}, {pipeline_mode = #tpu.pipeline_mode<synchronous>, transform_indices = @transform_6, window_bounds = array<i64: 49, 32>}, {pipeline_mode = #tpu.pipeline_mode<synchronous>, transform_indices = @transform_7, window_bounds = array<i64: 1, 32>}, {pipeline_mode = #tpu.pipeline_mode<synchronous>, transform_indices = @transform_8, window_bounds = array<i64: 1, 32>}, {pipeline_mode = #tpu.pipeline_mode<synchronous>, transform_indices = @transform_9, window_bounds = array<i64: 1, 32>}, {pipeline_mode = #tpu.pipeline_mode<synchronous>, transform_indices = @transform_10, window_bounds = array<i64: 32, 128>}, {pipeline_mode = #tpu.pipeline_mode<synchronous>, transform_indices = @transform_11, window_bounds = array<i64: 1, 128>}, {pipeline_mode = #tpu.pipeline_mode<synchronous>, transform_indices = @transform_12, window_bounds = array<i64: 128, 32>}, {pipeline_mode = #tpu.pipeline_mode<synchronous>, transform_indices = @transform_13, window_bounds = array<i64: 1, 32>}, {pipeline_mode = #tpu.pipeline_mode<synchronous>, transform_indices = @transform_14, window_bounds = array<i64: 1, 32>}, {pipeline_mode = #tpu.pipeline_mode<synchronous>, transform_indices = @transform_15, window_bounds = array<i64: 1, 32>}, {pipeline_mode = #tpu.pipeline_mode<synchronous>, transform_indices = @transform_16, window_bounds = array<i64: 1, 32>}, {pipeline_mode = #tpu.pipeline_mode<synchronous>, transform_indices = @transform_17, window_bounds = array<i64: 32, 128>}, {pipeline_mode = #tpu.pipeline_mode<synchronous>, transform_indices = @transform_18, window_bounds = array<i64: 1, 128>}, {transform_indices = @transform_19, window_bounds = array<i64: 1, 1, 128>}]} {
    %c0 = arith.constant 0 : index
    %c0_0 = arith.constant 0 : index
    %c0_1 = arith.constant 0 : index
    %0 = vector.load %arg1[%c0, %c0_0, %c0_1] : memref<1x16x48xf32, #tpu.memory_space<vmem>>, vector<1x16x48xf32>
    %1 = vector.shape_cast %0 : vector<1x16x48xf32> to vector<16x48xf32>
    %c0_2 = arith.constant 0 : index
    %c0_3 = arith.constant 0 : index
    %2 = vector.load %arg3[%c0_2, %c0_3] : memref<48x32xf32, #tpu.memory_space<vmem>>, vector<48x32xf32>
    %3 = arith.truncf %1 : vector<16x48xf32> to vector<16x48xbf16>
    %4 = arith.truncf %2 : vector<48x32xf32> to vector<48x32xbf16>
    %cst = arith.constant dense<0.000000e+00> : vector<16x32xf32>
    %5 = tpu.matmul %3, %4, %cst {dimension_numbers = #tpu.dot_dimension_numbers<[1], [0], [0], [1], [0, 0, 1, 1], [], []>} : vector<16x48xbf16>, vector<48x32xbf16>, vector<16x32xf32> -> vector<16x32xf32>
    %c0_4 = arith.constant 0 : index
    %c0_5 = arith.constant 0 : index
    %6 = vector.load %arg4[%c0_4, %c0_5] : memref<1x32xf32, #tpu.memory_space<vmem>>, vector<1x32xf32>
    %7 = vector.broadcast %6 : vector<1x32xf32> to vector<16x32xf32>
    %8 = arith.addf %5, %7 : vector<16x32xf32>
    %c0_6 = arith.constant 0 : index
    %c0_7 = arith.constant 0 : index
    %9 = vector.load %arg5[%c0_6, %c0_7] : memref<1x32xf32, #tpu.memory_space<vmem>>, vector<1x32xf32>
    %c0_8 = arith.constant 0 : index
    %c0_9 = arith.constant 0 : index
    %10 = vector.load %arg6[%c0_8, %c0_9] : memref<1x32xf32, #tpu.memory_space<vmem>>, vector<1x32xf32>
    %cst_10 = arith.constant dense<0.000000e+00> : vector<16xf32>
    %11 = vector.multi_reduction <add>, %8, %cst_10 [1] : vector<16x32xf32> to vector<16xf32>
    %12 = vector.shape_cast %11 : vector<16xf32> to vector<16x1xf32>
    %cst_11 = arith.constant 3.200000e+01 : f32
    %13 = vector.broadcast %cst_11 : f32 to vector<16x1xf32>
    %14 = arith.divf %12, %13 : vector<16x1xf32>
    %15 = vector.broadcast %14 : vector<16x1xf32> to vector<16x32xf32>
    %16 = arith.subf %8, %15 : vector<16x32xf32>
    %17 = arith.mulf %16, %16 : vector<16x32xf32>
    %cst_12 = arith.constant dense<0.000000e+00> : vector<16xf32>
    %18 = vector.multi_reduction <add>, %17, %cst_12 [1] : vector<16x32xf32> to vector<16xf32>
    %19 = vector.shape_cast %18 : vector<16xf32> to vector<16x1xf32>
    %cst_13 = arith.constant 3.200000e+01 : f32
    %20 = vector.broadcast %cst_13 : f32 to vector<16x1xf32>
    %21 = arith.divf %19, %20 : vector<16x1xf32>
    %cst_14 = arith.constant 9.99999997E-7 : f32
    %22 = vector.broadcast %cst_14 : f32 to vector<16x1xf32>
    %23 = arith.addf %21, %22 : vector<16x1xf32>
    %24 = math.rsqrt %23 : vector<16x1xf32>
    %25 = vector.broadcast %24 : vector<16x1xf32> to vector<16x32xf32>
    %26 = arith.mulf %16, %25 : vector<16x32xf32>
    %27 = vector.broadcast %9 : vector<1x32xf32> to vector<16x32xf32>
    %28 = arith.mulf %26, %27 : vector<16x32xf32>
    %29 = vector.broadcast %10 : vector<1x32xf32> to vector<16x32xf32>
    %30 = arith.addf %28, %29 : vector<16x32xf32>
    %c0_15 = arith.constant 0 : index
    %c0_16 = arith.constant 0 : index
    %31 = vector.load %arg2[%c0_15, %c0_16] : memref<784x16xf32, #tpu.memory_space<vmem>>, vector<784x16xf32>
    %32 = arith.truncf %31 : vector<784x16xf32> to vector<784x16xbf16>
    %33 = arith.truncf %30 : vector<16x32xf32> to vector<16x32xbf16>
    %cst_17 = arith.constant dense<0.000000e+00> : vector<784x32xf32>
    %34 = tpu.matmul %32, %33, %cst_17 {dimension_numbers = #tpu.dot_dimension_numbers<[1], [0], [0], [1], [0, 0, 1, 1], [], []>} : vector<784x16xbf16>, vector<16x32xbf16>, vector<784x32xf32> -> vector<784x32xf32>
    %cst_18 = arith.constant 0.000000e+00 : f32
    %35 = vector.broadcast %cst_18 : f32 to vector<16x32xf32>
    %36 = vector.extract_strided_slice %34 {offsets = [0, 0], sizes = [16, 32], strides = [1, 1]} : vector<784x32xf32> to vector<16x32xf32>
    %c0_19 = arith.constant 0 : index
    %c0_20 = arith.constant 0 : index
    %37 = vector.load %arg7[%c0_19, %c0_20] : memref<49x32xf32, #tpu.memory_space<vmem>>, vector<1x32xf32>
    %38 = vector.broadcast %37 : vector<1x32xf32> to vector<16x32xf32>
    %39 = arith.mulf %36, %38 : vector<16x32xf32>
    %40 = arith.addf %35, %39 : vector<16x32xf32>
    %41 = vector.extract_strided_slice %34 {offsets = [16, 0], sizes = [16, 32], strides = [1, 1]} : vector<784x32xf32> to vector<16x32xf32>
    %c1 = arith.constant 1 : index
    %c0_21 = arith.constant 0 : index
    %42 = vector.load %arg7[%c1, %c0_21] : memref<49x32xf32, #tpu.memory_space<vmem>>, vector<1x32xf32>
    %43 = vector.broadcast %42 : vector<1x32xf32> to vector<16x32xf32>
    %44 = arith.mulf %41, %43 : vector<16x32xf32>
    %45 = arith.addf %40, %44 : vector<16x32xf32>
    %46 = vector.extract_strided_slice %34 {offsets = [32, 0], sizes = [16, 32], strides = [1, 1]} : vector<784x32xf32> to vector<16x32xf32>
    %c2 = arith.constant 2 : index
    %c0_22 = arith.constant 0 : index
    %47 = vector.load %arg7[%c2, %c0_22] : memref<49x32xf32, #tpu.memory_space<vmem>>, vector<1x32xf32>
    %48 = vector.broadcast %47 : vector<1x32xf32> to vector<16x32xf32>
    %49 = arith.mulf %46, %48 : vector<16x32xf32>
    %50 = arith.addf %45, %49 : vector<16x32xf32>
    %51 = vector.extract_strided_slice %34 {offsets = [48, 0], sizes = [16, 32], strides = [1, 1]} : vector<784x32xf32> to vector<16x32xf32>
    %c3 = arith.constant 3 : index
    %c0_23 = arith.constant 0 : index
    %52 = vector.load %arg7[%c3, %c0_23] : memref<49x32xf32, #tpu.memory_space<vmem>>, vector<1x32xf32>
    %53 = vector.broadcast %52 : vector<1x32xf32> to vector<16x32xf32>
    %54 = arith.mulf %51, %53 : vector<16x32xf32>
    %55 = arith.addf %50, %54 : vector<16x32xf32>
    %56 = vector.extract_strided_slice %34 {offsets = [64, 0], sizes = [16, 32], strides = [1, 1]} : vector<784x32xf32> to vector<16x32xf32>
    %c4 = arith.constant 4 : index
    %c0_24 = arith.constant 0 : index
    %57 = vector.load %arg7[%c4, %c0_24] : memref<49x32xf32, #tpu.memory_space<vmem>>, vector<1x32xf32>
    %58 = vector.broadcast %57 : vector<1x32xf32> to vector<16x32xf32>
    %59 = arith.mulf %56, %58 : vector<16x32xf32>
    %60 = arith.addf %55, %59 : vector<16x32xf32>
    %61 = vector.extract_strided_slice %34 {offsets = [80, 0], sizes = [16, 32], strides = [1, 1]} : vector<784x32xf32> to vector<16x32xf32>
    %c5 = arith.constant 5 : index
    %c0_25 = arith.constant 0 : index
    %62 = vector.load %arg7[%c5, %c0_25] : memref<49x32xf32, #tpu.memory_space<vmem>>, vector<1x32xf32>
    %63 = vector.broadcast %62 : vector<1x32xf32> to vector<16x32xf32>
    %64 = arith.mulf %61, %63 : vector<16x32xf32>
    %65 = arith.addf %60, %64 : vector<16x32xf32>
    %66 = vector.extract_strided_slice %34 {offsets = [96, 0], sizes = [16, 32], strides = [1, 1]} : vector<784x32xf32> to vector<16x32xf32>
    %c6 = arith.constant 6 : index
    %c0_26 = arith.constant 0 : index
    %67 = vector.load %arg7[%c6, %c0_26] : memref<49x32xf32, #tpu.memory_space<vmem>>, vector<1x32xf32>
    %68 = vector.broadcast %67 : vector<1x32xf32> to vector<16x32xf32>
    %69 = arith.mulf %66, %68 : vector<16x32xf32>
    %70 = arith.addf %65, %69 : vector<16x32xf32>
    %71 = vector.extract_strided_slice %34 {offsets = [112, 0], sizes = [16, 32], strides = [1, 1]} : vector<784x32xf32> to vector<16x32xf32>
    %c7 = arith.constant 7 : index
    %c0_27 = arith.constant 0 : index
    %72 = vector.load %arg7[%c7, %c0_27] : memref<49x32xf32, #tpu.memory_space<vmem>>, vector<1x32xf32>
    %73 = vector.broadcast %72 : vector<1x32xf32> to vector<16x32xf32>
    %74 = arith.mulf %71, %73 : vector<16x32xf32>
    %75 = arith.addf %70, %74 : vector<16x32xf32>
    %76 = vector.extract_strided_slice %34 {offsets = [128, 0], sizes = [16, 32], strides = [1, 1]} : vector<784x32xf32> to vector<16x32xf32>
    %c8 = arith.constant 8 : index
    %c0_28 = arith.constant 0 : index
    %77 = vector.load %arg7[%c8, %c0_28] : memref<49x32xf32, #tpu.memory_space<vmem>>, vector<1x32xf32>
    %78 = vector.broadcast %77 : vector<1x32xf32> to vector<16x32xf32>
    %79 = arith.mulf %76, %78 : vector<16x32xf32>
    %80 = arith.addf %75, %79 : vector<16x32xf32>
    %81 = vector.extract_strided_slice %34 {offsets = [144, 0], sizes = [16, 32], strides = [1, 1]} : vector<784x32xf32> to vector<16x32xf32>
    %c9 = arith.constant 9 : index
    %c0_29 = arith.constant 0 : index
    %82 = vector.load %arg7[%c9, %c0_29] : memref<49x32xf32, #tpu.memory_space<vmem>>, vector<1x32xf32>
    %83 = vector.broadcast %82 : vector<1x32xf32> to vector<16x32xf32>
    %84 = arith.mulf %81, %83 : vector<16x32xf32>
    %85 = arith.addf %80, %84 : vector<16x32xf32>
    %86 = vector.extract_strided_slice %34 {offsets = [160, 0], sizes = [16, 32], strides = [1, 1]} : vector<784x32xf32> to vector<16x32xf32>
    %c10 = arith.constant 10 : index
    %c0_30 = arith.constant 0 : index
    %87 = vector.load %arg7[%c10, %c0_30] : memref<49x32xf32, #tpu.memory_space<vmem>>, vector<1x32xf32>
    %88 = vector.broadcast %87 : vector<1x32xf32> to vector<16x32xf32>
    %89 = arith.mulf %86, %88 : vector<16x32xf32>
    %90 = arith.addf %85, %89 : vector<16x32xf32>
    %91 = vector.extract_strided_slice %34 {offsets = [176, 0], sizes = [16, 32], strides = [1, 1]} : vector<784x32xf32> to vector<16x32xf32>
    %c11 = arith.constant 11 : index
    %c0_31 = arith.constant 0 : index
    %92 = vector.load %arg7[%c11, %c0_31] : memref<49x32xf32, #tpu.memory_space<vmem>>, vector<1x32xf32>
    %93 = vector.broadcast %92 : vector<1x32xf32> to vector<16x32xf32>
    %94 = arith.mulf %91, %93 : vector<16x32xf32>
    %95 = arith.addf %90, %94 : vector<16x32xf32>
    %96 = vector.extract_strided_slice %34 {offsets = [192, 0], sizes = [16, 32], strides = [1, 1]} : vector<784x32xf32> to vector<16x32xf32>
    %c12 = arith.constant 12 : index
    %c0_32 = arith.constant 0 : index
    %97 = vector.load %arg7[%c12, %c0_32] : memref<49x32xf32, #tpu.memory_space<vmem>>, vector<1x32xf32>
    %98 = vector.broadcast %97 : vector<1x32xf32> to vector<16x32xf32>
    %99 = arith.mulf %96, %98 : vector<16x32xf32>
    %100 = arith.addf %95, %99 : vector<16x32xf32>
    %101 = vector.extract_strided_slice %34 {offsets = [208, 0], sizes = [16, 32], strides = [1, 1]} : vector<784x32xf32> to vector<16x32xf32>
    %c13 = arith.constant 13 : index
    %c0_33 = arith.constant 0 : index
    %102 = vector.load %arg7[%c13, %c0_33] : memref<49x32xf32, #tpu.memory_space<vmem>>, vector<1x32xf32>
    %103 = vector.broadcast %102 : vector<1x32xf32> to vector<16x32xf32>
    %104 = arith.mulf %101, %103 : vector<16x32xf32>
    %105 = arith.addf %100, %104 : vector<16x32xf32>
    %106 = vector.extract_strided_slice %34 {offsets = [224, 0], sizes = [16, 32], strides = [1, 1]} : vector<784x32xf32> to vector<16x32xf32>
    %c14 = arith.constant 14 : index
    %c0_34 = arith.constant 0 : index
    %107 = vector.load %arg7[%c14, %c0_34] : memref<49x32xf32, #tpu.memory_space<vmem>>, vector<1x32xf32>
    %108 = vector.broadcast %107 : vector<1x32xf32> to vector<16x32xf32>
    %109 = arith.mulf %106, %108 : vector<16x32xf32>
    %110 = arith.addf %105, %109 : vector<16x32xf32>
    %111 = vector.extract_strided_slice %34 {offsets = [240, 0], sizes = [16, 32], strides = [1, 1]} : vector<784x32xf32> to vector<16x32xf32>
    %c15 = arith.constant 15 : index
    %c0_35 = arith.constant 0 : index
    %112 = vector.load %arg7[%c15, %c0_35] : memref<49x32xf32, #tpu.memory_space<vmem>>, vector<1x32xf32>
    %113 = vector.broadcast %112 : vector<1x32xf32> to vector<16x32xf32>
    %114 = arith.mulf %111, %113 : vector<16x32xf32>
    %115 = arith.addf %110, %114 : vector<16x32xf32>
    %116 = vector.extract_strided_slice %34 {offsets = [256, 0], sizes = [16, 32], strides = [1, 1]} : vector<784x32xf32> to vector<16x32xf32>
    %c16 = arith.constant 16 : index
    %c0_36 = arith.constant 0 : index
    %117 = vector.load %arg7[%c16, %c0_36] : memref<49x32xf32, #tpu.memory_space<vmem>>, vector<1x32xf32>
    %118 = vector.broadcast %117 : vector<1x32xf32> to vector<16x32xf32>
    %119 = arith.mulf %116, %118 : vector<16x32xf32>
    %120 = arith.addf %115, %119 : vector<16x32xf32>
    %121 = vector.extract_strided_slice %34 {offsets = [272, 0], sizes = [16, 32], strides = [1, 1]} : vector<784x32xf32> to vector<16x32xf32>
    %c17 = arith.constant 17 : index
    %c0_37 = arith.constant 0 : index
    %122 = vector.load %arg7[%c17, %c0_37] : memref<49x32xf32, #tpu.memory_space<vmem>>, vector<1x32xf32>
    %123 = vector.broadcast %122 : vector<1x32xf32> to vector<16x32xf32>
    %124 = arith.mulf %121, %123 : vector<16x32xf32>
    %125 = arith.addf %120, %124 : vector<16x32xf32>
    %126 = vector.extract_strided_slice %34 {offsets = [288, 0], sizes = [16, 32], strides = [1, 1]} : vector<784x32xf32> to vector<16x32xf32>
    %c18 = arith.constant 18 : index
    %c0_38 = arith.constant 0 : index
    %127 = vector.load %arg7[%c18, %c0_38] : memref<49x32xf32, #tpu.memory_space<vmem>>, vector<1x32xf32>
    %128 = vector.broadcast %127 : vector<1x32xf32> to vector<16x32xf32>
    %129 = arith.mulf %126, %128 : vector<16x32xf32>
    %130 = arith.addf %125, %129 : vector<16x32xf32>
    %131 = vector.extract_strided_slice %34 {offsets = [304, 0], sizes = [16, 32], strides = [1, 1]} : vector<784x32xf32> to vector<16x32xf32>
    %c19 = arith.constant 19 : index
    %c0_39 = arith.constant 0 : index
    %132 = vector.load %arg7[%c19, %c0_39] : memref<49x32xf32, #tpu.memory_space<vmem>>, vector<1x32xf32>
    %133 = vector.broadcast %132 : vector<1x32xf32> to vector<16x32xf32>
    %134 = arith.mulf %131, %133 : vector<16x32xf32>
    %135 = arith.addf %130, %134 : vector<16x32xf32>
    %136 = vector.extract_strided_slice %34 {offsets = [320, 0], sizes = [16, 32], strides = [1, 1]} : vector<784x32xf32> to vector<16x32xf32>
    %c20 = arith.constant 20 : index
    %c0_40 = arith.constant 0 : index
    %137 = vector.load %arg7[%c20, %c0_40] : memref<49x32xf32, #tpu.memory_space<vmem>>, vector<1x32xf32>
    %138 = vector.broadcast %137 : vector<1x32xf32> to vector<16x32xf32>
    %139 = arith.mulf %136, %138 : vector<16x32xf32>
    %140 = arith.addf %135, %139 : vector<16x32xf32>
    %141 = vector.extract_strided_slice %34 {offsets = [336, 0], sizes = [16, 32], strides = [1, 1]} : vector<784x32xf32> to vector<16x32xf32>
    %c21 = arith.constant 21 : index
    %c0_41 = arith.constant 0 : index
    %142 = vector.load %arg7[%c21, %c0_41] : memref<49x32xf32, #tpu.memory_space<vmem>>, vector<1x32xf32>
    %143 = vector.broadcast %142 : vector<1x32xf32> to vector<16x32xf32>
    %144 = arith.mulf %141, %143 : vector<16x32xf32>
    %145 = arith.addf %140, %144 : vector<16x32xf32>
    %146 = vector.extract_strided_slice %34 {offsets = [352, 0], sizes = [16, 32], strides = [1, 1]} : vector<784x32xf32> to vector<16x32xf32>
    %c22 = arith.constant 22 : index
    %c0_42 = arith.constant 0 : index
    %147 = vector.load %arg7[%c22, %c0_42] : memref<49x32xf32, #tpu.memory_space<vmem>>, vector<1x32xf32>
    %148 = vector.broadcast %147 : vector<1x32xf32> to vector<16x32xf32>
    %149 = arith.mulf %146, %148 : vector<16x32xf32>
    %150 = arith.addf %145, %149 : vector<16x32xf32>
    %151 = vector.extract_strided_slice %34 {offsets = [368, 0], sizes = [16, 32], strides = [1, 1]} : vector<784x32xf32> to vector<16x32xf32>
    %c23 = arith.constant 23 : index
    %c0_43 = arith.constant 0 : index
    %152 = vector.load %arg7[%c23, %c0_43] : memref<49x32xf32, #tpu.memory_space<vmem>>, vector<1x32xf32>
    %153 = vector.broadcast %152 : vector<1x32xf32> to vector<16x32xf32>
    %154 = arith.mulf %151, %153 : vector<16x32xf32>
    %155 = arith.addf %150, %154 : vector<16x32xf32>
    %156 = vector.extract_strided_slice %34 {offsets = [384, 0], sizes = [16, 32], strides = [1, 1]} : vector<784x32xf32> to vector<16x32xf32>
    %c24 = arith.constant 24 : index
    %c0_44 = arith.constant 0 : index
    %157 = vector.load %arg7[%c24, %c0_44] : memref<49x32xf32, #tpu.memory_space<vmem>>, vector<1x32xf32>
    %158 = vector.broadcast %157 : vector<1x32xf32> to vector<16x32xf32>
    %159 = arith.mulf %156, %158 : vector<16x32xf32>
    %160 = arith.addf %155, %159 : vector<16x32xf32>
    %161 = vector.extract_strided_slice %34 {offsets = [400, 0], sizes = [16, 32], strides = [1, 1]} : vector<784x32xf32> to vector<16x32xf32>
    %c25 = arith.constant 25 : index
    %c0_45 = arith.constant 0 : index
    %162 = vector.load %arg7[%c25, %c0_45] : memref<49x32xf32, #tpu.memory_space<vmem>>, vector<1x32xf32>
    %163 = vector.broadcast %162 : vector<1x32xf32> to vector<16x32xf32>
    %164 = arith.mulf %161, %163 : vector<16x32xf32>
    %165 = arith.addf %160, %164 : vector<16x32xf32>
    %166 = vector.extract_strided_slice %34 {offsets = [416, 0], sizes = [16, 32], strides = [1, 1]} : vector<784x32xf32> to vector<16x32xf32>
    %c26 = arith.constant 26 : index
    %c0_46 = arith.constant 0 : index
    %167 = vector.load %arg7[%c26, %c0_46] : memref<49x32xf32, #tpu.memory_space<vmem>>, vector<1x32xf32>
    %168 = vector.broadcast %167 : vector<1x32xf32> to vector<16x32xf32>
    %169 = arith.mulf %166, %168 : vector<16x32xf32>
    %170 = arith.addf %165, %169 : vector<16x32xf32>
    %171 = vector.extract_strided_slice %34 {offsets = [432, 0], sizes = [16, 32], strides = [1, 1]} : vector<784x32xf32> to vector<16x32xf32>
    %c27 = arith.constant 27 : index
    %c0_47 = arith.constant 0 : index
    %172 = vector.load %arg7[%c27, %c0_47] : memref<49x32xf32, #tpu.memory_space<vmem>>, vector<1x32xf32>
    %173 = vector.broadcast %172 : vector<1x32xf32> to vector<16x32xf32>
    %174 = arith.mulf %171, %173 : vector<16x32xf32>
    %175 = arith.addf %170, %174 : vector<16x32xf32>
    %176 = vector.extract_strided_slice %34 {offsets = [448, 0], sizes = [16, 32], strides = [1, 1]} : vector<784x32xf32> to vector<16x32xf32>
    %c28 = arith.constant 28 : index
    %c0_48 = arith.constant 0 : index
    %177 = vector.load %arg7[%c28, %c0_48] : memref<49x32xf32, #tpu.memory_space<vmem>>, vector<1x32xf32>
    %178 = vector.broadcast %177 : vector<1x32xf32> to vector<16x32xf32>
    %179 = arith.mulf %176, %178 : vector<16x32xf32>
    %180 = arith.addf %175, %179 : vector<16x32xf32>
    %181 = vector.extract_strided_slice %34 {offsets = [464, 0], sizes = [16, 32], strides = [1, 1]} : vector<784x32xf32> to vector<16x32xf32>
    %c29 = arith.constant 29 : index
    %c0_49 = arith.constant 0 : index
    %182 = vector.load %arg7[%c29, %c0_49] : memref<49x32xf32, #tpu.memory_space<vmem>>, vector<1x32xf32>
    %183 = vector.broadcast %182 : vector<1x32xf32> to vector<16x32xf32>
    %184 = arith.mulf %181, %183 : vector<16x32xf32>
    %185 = arith.addf %180, %184 : vector<16x32xf32>
    %186 = vector.extract_strided_slice %34 {offsets = [480, 0], sizes = [16, 32], strides = [1, 1]} : vector<784x32xf32> to vector<16x32xf32>
    %c30 = arith.constant 30 : index
    %c0_50 = arith.constant 0 : index
    %187 = vector.load %arg7[%c30, %c0_50] : memref<49x32xf32, #tpu.memory_space<vmem>>, vector<1x32xf32>
    %188 = vector.broadcast %187 : vector<1x32xf32> to vector<16x32xf32>
    %189 = arith.mulf %186, %188 : vector<16x32xf32>
    %190 = arith.addf %185, %189 : vector<16x32xf32>
    %191 = vector.extract_strided_slice %34 {offsets = [496, 0], sizes = [16, 32], strides = [1, 1]} : vector<784x32xf32> to vector<16x32xf32>
    %c31 = arith.constant 31 : index
    %c0_51 = arith.constant 0 : index
    %192 = vector.load %arg7[%c31, %c0_51] : memref<49x32xf32, #tpu.memory_space<vmem>>, vector<1x32xf32>
    %193 = vector.broadcast %192 : vector<1x32xf32> to vector<16x32xf32>
    %194 = arith.mulf %191, %193 : vector<16x32xf32>
    %195 = arith.addf %190, %194 : vector<16x32xf32>
    %196 = vector.extract_strided_slice %34 {offsets = [512, 0], sizes = [16, 32], strides = [1, 1]} : vector<784x32xf32> to vector<16x32xf32>
    %c32 = arith.constant 32 : index
    %c0_52 = arith.constant 0 : index
    %197 = vector.load %arg7[%c32, %c0_52] : memref<49x32xf32, #tpu.memory_space<vmem>>, vector<1x32xf32>
    %198 = vector.broadcast %197 : vector<1x32xf32> to vector<16x32xf32>
    %199 = arith.mulf %196, %198 : vector<16x32xf32>
    %200 = arith.addf %195, %199 : vector<16x32xf32>
    %201 = vector.extract_strided_slice %34 {offsets = [528, 0], sizes = [16, 32], strides = [1, 1]} : vector<784x32xf32> to vector<16x32xf32>
    %c33 = arith.constant 33 : index
    %c0_53 = arith.constant 0 : index
    %202 = vector.load %arg7[%c33, %c0_53] : memref<49x32xf32, #tpu.memory_space<vmem>>, vector<1x32xf32>
    %203 = vector.broadcast %202 : vector<1x32xf32> to vector<16x32xf32>
    %204 = arith.mulf %201, %203 : vector<16x32xf32>
    %205 = arith.addf %200, %204 : vector<16x32xf32>
    %206 = vector.extract_strided_slice %34 {offsets = [544, 0], sizes = [16, 32], strides = [1, 1]} : vector<784x32xf32> to vector<16x32xf32>
    %c34 = arith.constant 34 : index
    %c0_54 = arith.constant 0 : index
    %207 = vector.load %arg7[%c34, %c0_54] : memref<49x32xf32, #tpu.memory_space<vmem>>, vector<1x32xf32>
    %208 = vector.broadcast %207 : vector<1x32xf32> to vector<16x32xf32>
    %209 = arith.mulf %206, %208 : vector<16x32xf32>
    %210 = arith.addf %205, %209 : vector<16x32xf32>
    %211 = vector.extract_strided_slice %34 {offsets = [560, 0], sizes = [16, 32], strides = [1, 1]} : vector<784x32xf32> to vector<16x32xf32>
    %c35 = arith.constant 35 : index
    %c0_55 = arith.constant 0 : index
    %212 = vector.load %arg7[%c35, %c0_55] : memref<49x32xf32, #tpu.memory_space<vmem>>, vector<1x32xf32>
    %213 = vector.broadcast %212 : vector<1x32xf32> to vector<16x32xf32>
    %214 = arith.mulf %211, %213 : vector<16x32xf32>
    %215 = arith.addf %210, %214 : vector<16x32xf32>
    %216 = vector.extract_strided_slice %34 {offsets = [576, 0], sizes = [16, 32], strides = [1, 1]} : vector<784x32xf32> to vector<16x32xf32>
    %c36 = arith.constant 36 : index
    %c0_56 = arith.constant 0 : index
    %217 = vector.load %arg7[%c36, %c0_56] : memref<49x32xf32, #tpu.memory_space<vmem>>, vector<1x32xf32>
    %218 = vector.broadcast %217 : vector<1x32xf32> to vector<16x32xf32>
    %219 = arith.mulf %216, %218 : vector<16x32xf32>
    %220 = arith.addf %215, %219 : vector<16x32xf32>
    %221 = vector.extract_strided_slice %34 {offsets = [592, 0], sizes = [16, 32], strides = [1, 1]} : vector<784x32xf32> to vector<16x32xf32>
    %c37 = arith.constant 37 : index
    %c0_57 = arith.constant 0 : index
    %222 = vector.load %arg7[%c37, %c0_57] : memref<49x32xf32, #tpu.memory_space<vmem>>, vector<1x32xf32>
    %223 = vector.broadcast %222 : vector<1x32xf32> to vector<16x32xf32>
    %224 = arith.mulf %221, %223 : vector<16x32xf32>
    %225 = arith.addf %220, %224 : vector<16x32xf32>
    %226 = vector.extract_strided_slice %34 {offsets = [608, 0], sizes = [16, 32], strides = [1, 1]} : vector<784x32xf32> to vector<16x32xf32>
    %c38 = arith.constant 38 : index
    %c0_58 = arith.constant 0 : index
    %227 = vector.load %arg7[%c38, %c0_58] : memref<49x32xf32, #tpu.memory_space<vmem>>, vector<1x32xf32>
    %228 = vector.broadcast %227 : vector<1x32xf32> to vector<16x32xf32>
    %229 = arith.mulf %226, %228 : vector<16x32xf32>
    %230 = arith.addf %225, %229 : vector<16x32xf32>
    %231 = vector.extract_strided_slice %34 {offsets = [624, 0], sizes = [16, 32], strides = [1, 1]} : vector<784x32xf32> to vector<16x32xf32>
    %c39 = arith.constant 39 : index
    %c0_59 = arith.constant 0 : index
    %232 = vector.load %arg7[%c39, %c0_59] : memref<49x32xf32, #tpu.memory_space<vmem>>, vector<1x32xf32>
    %233 = vector.broadcast %232 : vector<1x32xf32> to vector<16x32xf32>
    %234 = arith.mulf %231, %233 : vector<16x32xf32>
    %235 = arith.addf %230, %234 : vector<16x32xf32>
    %236 = vector.extract_strided_slice %34 {offsets = [640, 0], sizes = [16, 32], strides = [1, 1]} : vector<784x32xf32> to vector<16x32xf32>
    %c40 = arith.constant 40 : index
    %c0_60 = arith.constant 0 : index
    %237 = vector.load %arg7[%c40, %c0_60] : memref<49x32xf32, #tpu.memory_space<vmem>>, vector<1x32xf32>
    %238 = vector.broadcast %237 : vector<1x32xf32> to vector<16x32xf32>
    %239 = arith.mulf %236, %238 : vector<16x32xf32>
    %240 = arith.addf %235, %239 : vector<16x32xf32>
    %241 = vector.extract_strided_slice %34 {offsets = [656, 0], sizes = [16, 32], strides = [1, 1]} : vector<784x32xf32> to vector<16x32xf32>
    %c41 = arith.constant 41 : index
    %c0_61 = arith.constant 0 : index
    %242 = vector.load %arg7[%c41, %c0_61] : memref<49x32xf32, #tpu.memory_space<vmem>>, vector<1x32xf32>
    %243 = vector.broadcast %242 : vector<1x32xf32> to vector<16x32xf32>
    %244 = arith.mulf %241, %243 : vector<16x32xf32>
    %245 = arith.addf %240, %244 : vector<16x32xf32>
    %246 = vector.extract_strided_slice %34 {offsets = [672, 0], sizes = [16, 32], strides = [1, 1]} : vector<784x32xf32> to vector<16x32xf32>
    %c42 = arith.constant 42 : index
    %c0_62 = arith.constant 0 : index
    %247 = vector.load %arg7[%c42, %c0_62] : memref<49x32xf32, #tpu.memory_space<vmem>>, vector<1x32xf32>
    %248 = vector.broadcast %247 : vector<1x32xf32> to vector<16x32xf32>
    %249 = arith.mulf %246, %248 : vector<16x32xf32>
    %250 = arith.addf %245, %249 : vector<16x32xf32>
    %251 = vector.extract_strided_slice %34 {offsets = [688, 0], sizes = [16, 32], strides = [1, 1]} : vector<784x32xf32> to vector<16x32xf32>
    %c43 = arith.constant 43 : index
    %c0_63 = arith.constant 0 : index
    %252 = vector.load %arg7[%c43, %c0_63] : memref<49x32xf32, #tpu.memory_space<vmem>>, vector<1x32xf32>
    %253 = vector.broadcast %252 : vector<1x32xf32> to vector<16x32xf32>
    %254 = arith.mulf %251, %253 : vector<16x32xf32>
    %255 = arith.addf %250, %254 : vector<16x32xf32>
    %256 = vector.extract_strided_slice %34 {offsets = [704, 0], sizes = [16, 32], strides = [1, 1]} : vector<784x32xf32> to vector<16x32xf32>
    %c44 = arith.constant 44 : index
    %c0_64 = arith.constant 0 : index
    %257 = vector.load %arg7[%c44, %c0_64] : memref<49x32xf32, #tpu.memory_space<vmem>>, vector<1x32xf32>
    %258 = vector.broadcast %257 : vector<1x32xf32> to vector<16x32xf32>
    %259 = arith.mulf %256, %258 : vector<16x32xf32>
    %260 = arith.addf %255, %259 : vector<16x32xf32>
    %261 = vector.extract_strided_slice %34 {offsets = [720, 0], sizes = [16, 32], strides = [1, 1]} : vector<784x32xf32> to vector<16x32xf32>
    %c45 = arith.constant 45 : index
    %c0_65 = arith.constant 0 : index
    %262 = vector.load %arg7[%c45, %c0_65] : memref<49x32xf32, #tpu.memory_space<vmem>>, vector<1x32xf32>
    %263 = vector.broadcast %262 : vector<1x32xf32> to vector<16x32xf32>
    %264 = arith.mulf %261, %263 : vector<16x32xf32>
    %265 = arith.addf %260, %264 : vector<16x32xf32>
    %266 = vector.extract_strided_slice %34 {offsets = [736, 0], sizes = [16, 32], strides = [1, 1]} : vector<784x32xf32> to vector<16x32xf32>
    %c46 = arith.constant 46 : index
    %c0_66 = arith.constant 0 : index
    %267 = vector.load %arg7[%c46, %c0_66] : memref<49x32xf32, #tpu.memory_space<vmem>>, vector<1x32xf32>
    %268 = vector.broadcast %267 : vector<1x32xf32> to vector<16x32xf32>
    %269 = arith.mulf %266, %268 : vector<16x32xf32>
    %270 = arith.addf %265, %269 : vector<16x32xf32>
    %271 = vector.extract_strided_slice %34 {offsets = [752, 0], sizes = [16, 32], strides = [1, 1]} : vector<784x32xf32> to vector<16x32xf32>
    %c47 = arith.constant 47 : index
    %c0_67 = arith.constant 0 : index
    %272 = vector.load %arg7[%c47, %c0_67] : memref<49x32xf32, #tpu.memory_space<vmem>>, vector<1x32xf32>
    %273 = vector.broadcast %272 : vector<1x32xf32> to vector<16x32xf32>
    %274 = arith.mulf %271, %273 : vector<16x32xf32>
    %275 = arith.addf %270, %274 : vector<16x32xf32>
    %276 = vector.extract_strided_slice %34 {offsets = [768, 0], sizes = [16, 32], strides = [1, 1]} : vector<784x32xf32> to vector<16x32xf32>
    %c48 = arith.constant 48 : index
    %c0_68 = arith.constant 0 : index
    %277 = vector.load %arg7[%c48, %c0_68] : memref<49x32xf32, #tpu.memory_space<vmem>>, vector<1x32xf32>
    %278 = vector.broadcast %277 : vector<1x32xf32> to vector<16x32xf32>
    %279 = arith.mulf %276, %278 : vector<16x32xf32>
    %280 = arith.addf %275, %279 : vector<16x32xf32>
    %c0_69 = arith.constant 0 : index
    %c0_70 = arith.constant 0 : index
    %281 = vector.load %arg8[%c0_69, %c0_70] : memref<1x32xf32, #tpu.memory_space<vmem>>, vector<1x32xf32>
    %282 = vector.broadcast %281 : vector<1x32xf32> to vector<16x32xf32>
    %283 = arith.addf %280, %282 : vector<16x32xf32>
    %c0_71 = arith.constant 0 : index
    %c0_72 = arith.constant 0 : index
    %284 = vector.load %arg9[%c0_71, %c0_72] : memref<1x32xf32, #tpu.memory_space<vmem>>, vector<1x32xf32>
    %c0_73 = arith.constant 0 : index
    %c0_74 = arith.constant 0 : index
    %285 = vector.load %arg10[%c0_73, %c0_74] : memref<1x32xf32, #tpu.memory_space<vmem>>, vector<1x32xf32>
    %cst_75 = arith.constant dense<0.000000e+00> : vector<16xf32>
    %286 = vector.multi_reduction <add>, %283, %cst_75 [1] : vector<16x32xf32> to vector<16xf32>
    %287 = vector.shape_cast %286 : vector<16xf32> to vector<16x1xf32>
    %cst_76 = arith.constant 3.200000e+01 : f32
    %288 = vector.broadcast %cst_76 : f32 to vector<16x1xf32>
    %289 = arith.divf %287, %288 : vector<16x1xf32>
    %290 = vector.broadcast %289 : vector<16x1xf32> to vector<16x32xf32>
    %291 = arith.subf %283, %290 : vector<16x32xf32>
    %292 = arith.mulf %291, %291 : vector<16x32xf32>
    %cst_77 = arith.constant dense<0.000000e+00> : vector<16xf32>
    %293 = vector.multi_reduction <add>, %292, %cst_77 [1] : vector<16x32xf32> to vector<16xf32>
    %294 = vector.shape_cast %293 : vector<16xf32> to vector<16x1xf32>
    %cst_78 = arith.constant 3.200000e+01 : f32
    %295 = vector.broadcast %cst_78 : f32 to vector<16x1xf32>
    %296 = arith.divf %294, %295 : vector<16x1xf32>
    %cst_79 = arith.constant 9.99999997E-7 : f32
    %297 = vector.broadcast %cst_79 : f32 to vector<16x1xf32>
    %298 = arith.addf %296, %297 : vector<16x1xf32>
    %299 = math.rsqrt %298 : vector<16x1xf32>
    %300 = vector.broadcast %299 : vector<16x1xf32> to vector<16x32xf32>
    %301 = arith.mulf %291, %300 : vector<16x32xf32>
    %302 = vector.broadcast %284 : vector<1x32xf32> to vector<16x32xf32>
    %303 = arith.mulf %301, %302 : vector<16x32xf32>
    %304 = vector.broadcast %285 : vector<1x32xf32> to vector<16x32xf32>
    %305 = arith.addf %303, %304 : vector<16x32xf32>
    %c0_80 = arith.constant 0 : index
    %c0_81 = arith.constant 0 : index
    %306 = vector.load %arg11[%c0_80, %c0_81] : memref<32x128xf32, #tpu.memory_space<vmem>>, vector<32x128xf32>
    %307 = arith.truncf %305 : vector<16x32xf32> to vector<16x32xbf16>
    %308 = arith.truncf %306 : vector<32x128xf32> to vector<32x128xbf16>
    %cst_82 = arith.constant dense<0.000000e+00> : vector<16x128xf32>
    %309 = tpu.matmul %307, %308, %cst_82 {dimension_numbers = #tpu.dot_dimension_numbers<[1], [0], [0], [1], [0, 0, 1, 1], [], []>} : vector<16x32xbf16>, vector<32x128xbf16>, vector<16x128xf32> -> vector<16x128xf32>
    %c0_83 = arith.constant 0 : index
    %c0_84 = arith.constant 0 : index
    %310 = vector.load %arg12[%c0_83, %c0_84] : memref<1x128xf32, #tpu.memory_space<vmem>>, vector<1x128xf32>
    %311 = vector.broadcast %310 : vector<1x128xf32> to vector<16x128xf32>
    %312 = arith.addf %309, %311 : vector<16x128xf32>
    %cst_85 = arith.constant 5.000000e-01 : f32
    %313 = vector.broadcast %cst_85 : f32 to vector<16x128xf32>
    %314 = arith.mulf %313, %312 : vector<16x128xf32>
    %cst_86 = arith.constant 4.471500e-02 : f32
    %315 = vector.broadcast %cst_86 : f32 to vector<16x128xf32>
    %316 = arith.mulf %315, %312 : vector<16x128xf32>
    %317 = arith.mulf %316, %312 : vector<16x128xf32>
    %318 = arith.mulf %317, %312 : vector<16x128xf32>
    %319 = arith.addf %312, %318 : vector<16x128xf32>
    %cst_87 = arith.constant 0.797884583 : f32
    %320 = vector.broadcast %cst_87 : f32 to vector<16x128xf32>
    %321 = arith.mulf %320, %319 : vector<16x128xf32>
    %322 = math.tanh %321 : vector<16x128xf32>
    %cst_88 = arith.constant 1.000000e+00 : f32
    %323 = vector.broadcast %cst_88 : f32 to vector<16x128xf32>
    %324 = arith.addf %323, %322 : vector<16x128xf32>
    %325 = arith.mulf %314, %324 : vector<16x128xf32>
    %c0_89 = arith.constant 0 : index
    %c0_90 = arith.constant 0 : index
    %326 = vector.load %arg13[%c0_89, %c0_90] : memref<128x32xf32, #tpu.memory_space<vmem>>, vector<128x32xf32>
    %327 = arith.truncf %325 : vector<16x128xf32> to vector<16x128xbf16>
    %328 = arith.truncf %326 : vector<128x32xf32> to vector<128x32xbf16>
    %cst_91 = arith.constant dense<0.000000e+00> : vector<16x32xf32>
    %329 = tpu.matmul %327, %328, %cst_91 {dimension_numbers = #tpu.dot_dimension_numbers<[1], [0], [0], [1], [0, 0, 1, 1], [], []>} : vector<16x128xbf16>, vector<128x32xbf16>, vector<16x32xf32> -> vector<16x32xf32>
    %c0_92 = arith.constant 0 : index
    %c0_93 = arith.constant 0 : index
    %330 = vector.load %arg14[%c0_92, %c0_93] : memref<1x32xf32, #tpu.memory_space<vmem>>, vector<1x32xf32>
    %331 = vector.broadcast %330 : vector<1x32xf32> to vector<16x32xf32>
    %332 = arith.addf %329, %331 : vector<16x32xf32>
    %c0_94 = arith.constant 0 : index
    %c0_95 = arith.constant 0 : index
    %333 = vector.load %arg15[%c0_94, %c0_95] : memref<1x32xf32, #tpu.memory_space<vmem>>, vector<1x32xf32>
    %334 = vector.broadcast %333 : vector<1x32xf32> to vector<16x32xf32>
    %335 = arith.mulf %334, %332 : vector<16x32xf32>
    %336 = arith.addf %30, %335 : vector<16x32xf32>
    %cst_96 = arith.constant dense<0.000000e+00> : vector<32xf32>
    %337 = vector.multi_reduction <add>, %336, %cst_96 [0] : vector<16x32xf32> to vector<32xf32>
    %338 = vector.shape_cast %337 : vector<32xf32> to vector<1x32xf32>
    %cst_97 = arith.constant 1.600000e+01 : f32
    %339 = vector.broadcast %cst_97 : f32 to vector<1x32xf32>
    %340 = arith.divf %338, %339 : vector<1x32xf32>
    %c0_98 = arith.constant 0 : index
    %c0_99 = arith.constant 0 : index
    %341 = vector.load %arg16[%c0_98, %c0_99] : memref<1x32xf32, #tpu.memory_space<vmem>>, vector<1x32xf32>
    %c0_100 = arith.constant 0 : index
    %c0_101 = arith.constant 0 : index
    %342 = vector.load %arg17[%c0_100, %c0_101] : memref<1x32xf32, #tpu.memory_space<vmem>>, vector<1x32xf32>
    %cst_102 = arith.constant dense<0.000000e+00> : vector<1xf32>
    %343 = vector.multi_reduction <add>, %340, %cst_102 [1] : vector<1x32xf32> to vector<1xf32>
    %344 = vector.shape_cast %343 : vector<1xf32> to vector<1x1xf32>
    %cst_103 = arith.constant 3.200000e+01 : f32
    %345 = vector.broadcast %cst_103 : f32 to vector<1x1xf32>
    %346 = arith.divf %344, %345 : vector<1x1xf32>
    %347 = vector.broadcast %346 : vector<1x1xf32> to vector<1x32xf32>
    %348 = arith.subf %340, %347 : vector<1x32xf32>
    %349 = arith.mulf %348, %348 : vector<1x32xf32>
    %cst_104 = arith.constant dense<0.000000e+00> : vector<1xf32>
    %350 = vector.multi_reduction <add>, %349, %cst_104 [1] : vector<1x32xf32> to vector<1xf32>
    %351 = vector.shape_cast %350 : vector<1xf32> to vector<1x1xf32>
    %cst_105 = arith.constant 3.200000e+01 : f32
    %352 = vector.broadcast %cst_105 : f32 to vector<1x1xf32>
    %353 = arith.divf %351, %352 : vector<1x1xf32>
    %cst_106 = arith.constant 9.99999997E-7 : f32
    %354 = vector.broadcast %cst_106 : f32 to vector<1x1xf32>
    %355 = arith.addf %353, %354 : vector<1x1xf32>
    %356 = math.rsqrt %355 : vector<1x1xf32>
    %357 = vector.broadcast %356 : vector<1x1xf32> to vector<1x32xf32>
    %358 = arith.mulf %348, %357 : vector<1x32xf32>
    %359 = arith.mulf %358, %341 : vector<1x32xf32>
    %360 = arith.addf %359, %342 : vector<1x32xf32>
    %c0_107 = arith.constant 0 : index
    %c0_108 = arith.constant 0 : index
    %361 = vector.load %arg18[%c0_107, %c0_108] : memref<32x128xf32, #tpu.memory_space<vmem>>, vector<32x128xf32>
    %362 = arith.truncf %360 : vector<1x32xf32> to vector<1x32xbf16>
    %363 = arith.truncf %361 : vector<32x128xf32> to vector<32x128xbf16>
    %cst_109 = arith.constant dense<0.000000e+00> : vector<1x128xf32>
    %364 = tpu.matmul %362, %363, %cst_109 {dimension_numbers = #tpu.dot_dimension_numbers<[1], [0], [0], [1], [0, 0, 1, 1], [], []>} : vector<1x32xbf16>, vector<32x128xbf16>, vector<1x128xf32> -> vector<1x128xf32>
    %c0_110 = arith.constant 0 : index
    %c0_111 = arith.constant 0 : index
    %365 = vector.load %arg19[%c0_110, %c0_111] : memref<1x128xf32, #tpu.memory_space<vmem>>, vector<1x128xf32>
    %366 = arith.addf %364, %365 : vector<1x128xf32>
    %c0_112 = arith.constant 0 : index
    %c0_113 = arith.constant 0 : index
    %c0_114 = arith.constant 0 : index
    %367 = vector.load %arg20[%c0_112, %c0_113, %c0_114] : memref<1x1x128xf32, #tpu.memory_space<vmem>>, vector<1x1x128xf32>
    %368 = vector.shape_cast %367 : vector<1x1x128xf32> to vector<1x128xf32>
    %369 = vector.shape_cast %366 : vector<1x128xf32> to vector<1x1x128xf32>
    tpu.vector_store %arg20[%c0_112, %c0_113, %c0_114], %369 {strides = array<i32>} : memref<1x1x128xf32, #tpu.memory_space<vmem>>, vector<1x1x128xf32>,
    return
  }
  func.func @transform_0(%arg0: i32) -> (i32, i32, i32) {
    %c0_i32 = arith.constant 0 : i32
    %c0_i32_0 = arith.constant 0 : i32
    %c0_i32_1 = arith.constant 0 : i32
    return %arg0, %c0_i32, %c0_i32_0 : i32, i32, i32
  }
  func.func @transform_1(%arg0: i32) -> (i32, i32) {
    %c0_i32 = arith.constant 0 : i32
    %c0_i32_0 = arith.constant 0 : i32
    %c0_i32_1 = arith.constant 0 : i32
    return %c0_i32, %c0_i32_0 : i32, i32
  }
  func.func @transform_2(%arg0: i32) -> (i32, i32) {
    %c0_i32 = arith.constant 0 : i32
    %c0_i32_0 = arith.constant 0 : i32
    %c0_i32_1 = arith.constant 0 : i32
    return %c0_i32, %c0_i32_0 : i32, i32
  }
  func.func @transform_3(%arg0: i32) -> (i32, i32) {
    %c0_i32 = arith.constant 0 : i32
    %c0_i32_0 = arith.constant 0 : i32
    %c0_i32_1 = arith.constant 0 : i32
    return %c0_i32, %c0_i32_0 : i32, i32
  }
  func.func @transform_4(%arg0: i32) -> (i32, i32) {
    %c0_i32 = arith.constant 0 : i32
    %c0_i32_0 = arith.constant 0 : i32
    %c0_i32_1 = arith.constant 0 : i32
    return %c0_i32, %c0_i32_0 : i32, i32
  }
  func.func @transform_5(%arg0: i32) -> (i32, i32) {
    %c0_i32 = arith.constant 0 : i32
    %c0_i32_0 = arith.constant 0 : i32
    %c0_i32_1 = arith.constant 0 : i32
    return %c0_i32, %c0_i32_0 : i32, i32
  }
  func.func @transform_6(%arg0: i32) -> (i32, i32) {
    %c0_i32 = arith.constant 0 : i32
    %c0_i32_0 = arith.constant 0 : i32
    %c0_i32_1 = arith.constant 0 : i32
    return %c0_i32, %c0_i32_0 : i32, i32
  }
  func.func @transform_7(%arg0: i32) -> (i32, i32) {
    %c0_i32 = arith.constant 0 : i32
    %c0_i32_0 = arith.constant 0 : i32
    %c0_i32_1 = arith.constant 0 : i32
    return %c0_i32, %c0_i32_0 : i32, i32
  }
  func.func @transform_8(%arg0: i32) -> (i32, i32) {
    %c0_i32 = arith.constant 0 : i32
    %c0_i32_0 = arith.constant 0 : i32
    %c0_i32_1 = arith.constant 0 : i32
    return %c0_i32, %c0_i32_0 : i32, i32
  }
  func.func @transform_9(%arg0: i32) -> (i32, i32) {
    %c0_i32 = arith.constant 0 : i32
    %c0_i32_0 = arith.constant 0 : i32
    %c0_i32_1 = arith.constant 0 : i32
    return %c0_i32, %c0_i32_0 : i32, i32
  }
  func.func @transform_10(%arg0: i32) -> (i32, i32) {
    %c0_i32 = arith.constant 0 : i32
    %c0_i32_0 = arith.constant 0 : i32
    %c0_i32_1 = arith.constant 0 : i32
    return %c0_i32, %c0_i32_0 : i32, i32
  }
  func.func @transform_11(%arg0: i32) -> (i32, i32) {
    %c0_i32 = arith.constant 0 : i32
    %c0_i32_0 = arith.constant 0 : i32
    %c0_i32_1 = arith.constant 0 : i32
    return %c0_i32, %c0_i32_0 : i32, i32
  }
  func.func @transform_12(%arg0: i32) -> (i32, i32) {
    %c0_i32 = arith.constant 0 : i32
    %c0_i32_0 = arith.constant 0 : i32
    %c0_i32_1 = arith.constant 0 : i32
    return %c0_i32, %c0_i32_0 : i32, i32
  }
  func.func @transform_13(%arg0: i32) -> (i32, i32) {
    %c0_i32 = arith.constant 0 : i32
    %c0_i32_0 = arith.constant 0 : i32
    %c0_i32_1 = arith.constant 0 : i32
    return %c0_i32, %c0_i32_0 : i32, i32
  }
  func.func @transform_14(%arg0: i32) -> (i32, i32) {
    %c0_i32 = arith.constant 0 : i32
    %c0_i32_0 = arith.constant 0 : i32
    %c0_i32_1 = arith.constant 0 : i32
    return %c0_i32, %c0_i32_0 : i32, i32
  }
  func.func @transform_15(%arg0: i32) -> (i32, i32) {
    %c0_i32 = arith.constant 0 : i32
    %c0_i32_0 = arith.constant 0 : i32
    %c0_i32_1 = arith.constant 0 : i32
    return %c0_i32, %c0_i32_0 : i32, i32
  }
  func.func @transform_16(%arg0: i32) -> (i32, i32) {
    %c0_i32 = arith.constant 0 : i32
    %c0_i32_0 = arith.constant 0 : i32
    %c0_i32_1 = arith.constant 0 : i32
    return %c0_i32, %c0_i32_0 : i32, i32
  }
  func.func @transform_17(%arg0: i32) -> (i32, i32) {
    %c0_i32 = arith.constant 0 : i32
    %c0_i32_0 = arith.constant 0 : i32
    %c0_i32_1 = arith.constant 0 : i32
    return %c0_i32, %c0_i32_0 : i32, i32
  }
  func.func @transform_18(%arg0: i32) -> (i32, i32) {
    %c0_i32 = arith.constant 0 : i32
    %c0_i32_0 = arith.constant 0 : i32
    %c0_i32_1 = arith.constant 0 : i32
    return %c0_i32, %c0_i32_0 : i32, i32
  }
  func.func @transform_19(%arg0: i32) -> (i32, i32, i32) {
    %c0_i32 = arith.constant 0 : i32
    %c0_i32_0 = arith.constant 0 : i32
    %c0_i32_1 = arith.constant 0 : i32
    return %arg0, %c0_i32, %c0_i32_0 : i32, i32, i32
  }
}

</mosaic_0001>

<bundles_post_ra>
// kernel: multimodal_forward.3
= control target key start
LH: loop header
LB: loop body
LE: loop exit
PB: predicated region body
PF: predicated region fallthrough
CT: control target
= control target key end

     0   :  { %vm44_vm0 = vcmask 1043456   ;;  %vm37_vm1 = vcmask 64512   ;;  %vm107_vm2 = vcmask 195584   ;;  %vm182_vm3 = vcmask 523264   ;;  %s541_s2 = inlined_call_operand.vmem [shape: f32[8,64], index: 2, kind: input, shape index: {}]   ;;  %s542_s0 = inlined_call_operand.vmem [shape: f32[24,8], index: 0, kind: input, shape index: {}]   ;;  %s543_s1 = inlined_call_operand.vmem [shape: f32[24,24], index: 1, kind: input, shape index: {}]   ;;  %s544_s4 = inlined_call_operand.vmem [shape: f32[64,128], index: 4, kind: input, shape index: {}]   ;;  %s545_s3 = inlined_call_operand.vmem [shape: f32[1,64], index: 3, kind: input, shape index: {}]   ;;  %s546_s5 = inlined_call_operand.vmem [shape: f32[1,128], index: 5, kind: input, shape index: {}]   ;;  %s547_s6 = inlined_call_operand.vmem [shape: f32[8,24], index: 6, kind: input, shape index: {}]   ;;  %s548_s7 = inlined_call_operand.vmem [shape: f32[8,128], index: 7, kind: output, shape index: {}]  }
   0x1   :  { %v33_v0 = vld [vmem:[%s541_s2] sm:$0xff]  ;;  %v31_v2 = vld [vmem:[%s542_s0 + $0x8] sm:$0xff]  ;;  %v32_v4 = vld [vmem:[%s542_s0 + $0x10] sm:$0xff]  ;;  %v430_v52 = vmov 0.0   ;;  %vm431_vm4 = vmmov 0  }
   0x2   :  { %v30_v1 = vld [vmem:[%s542_s0] sm:$0xff]  ;;  %v36_v3 = vpack.c.bf16 %v33_v0, %v33_v0  ;;  %v35_v7 = vpack.c.bf16 %v32_v4, %v32_v4  ;;  %v28_v9 = vld [vmem:[%s543_s1 + $0x8] sm:$0xff]  ;;  %v170_v13 = vld [vmem:[%s544_s4 + $0x10] sm:$0xff] }
   0x3   :  { %v34_v5 = vpack.c.bf16 %v31_v2, %v30_v1  ;;  %v27_v8 = vld [vmem:[%s543_s1] sm:$0xff]  ;;  %v169_v12 = vld [vmem:[%s544_s4 + $0x8] sm:$0xff]  ;;  %v171_v15 = vld [vmem:[%s544_s4 + $0x18] sm:$0xff] }
   0x4   :  { %425 = vmatprep.subr.msk.bf16.mxu0 %vm44_vm0, %v36_v3  ;;  %v46_v6 = vsel %vm44_vm0, %v36_v3, 0  ;;  %v96_v10 = vpack.c.bf16 %v28_v9, %v27_v8  ;;  %v168_v11 = vld [vmem:[%s544_s4] sm:$0xff]  ;;  %v179_v16 = vpack.c.bf16 %v171_v15, %v170_v13  ;;  %v29_v23 = vld [vmem:[%s543_s1 + $0x10] sm:$0xff]  ;;  %v173_v27 = vld [vmem:[%s544_s4 + $0x28] sm:$0xff] }
   0x5   :  { %385 = vmatprep.mubr.msk.bf16.mxu0 %vm37_vm1, %v34_v5  ;;  %384 = vmatpush3.bf16.msra.mxu0 %v46_v6  ;;  %v178_v14 = vpack.c.bf16 %v169_v12, %v168_v11  ;;  %v97_v25 = vpack.c.bf16 %v29_v23, %v29_v23  ;;  %v172_v26 = vld [vmem:[%s544_s4 + $0x20] sm:$0xff]  ;;  %v174_v29 = vld [vmem:[%s544_s4 + $0x30] sm:$0xff]  ;;  %v175_v30 = vld [vmem:[%s544_s4 + $0x38] sm:$0xff] }
   0x6   :  { %393 = vmatprep.mubr.msk.bf16.mxu1 %vm107_vm2, %v96_v10  ;;  %v180_v28 = vpack.c.bf16 %v173_v27, %v172_v26  ;;  %v181_v31 = vpack.c.bf16 %v175_v30, %v174_v29  ;;  %v354_v32 = vld [vmem:[%s545_s3] ss:$0 sm:$0xff] }
   0x7   :  { %397 = vmatprep.subr.bf16.mxu0 %v178_v14  ;;  %v359_v54 = vld [vmem:[%s546_s5] ss:$0 sm:$0xff] }
   0x8   :  { %386 = vmatmul.mubr.msk.bf16.vlgmr.msra.gmra.mrb[0].mxu0 %vm37_vm1, %v35_v7  ;;  %v297_v63 = vld [vmem:[%s547_s6] sm:$0xff] }
   0x9   :  { %398 = vmatpush3.bf16.msra.mxu0 %v178_v14  ;;  %v298_v1 = vpack.c.bf16 %v297_v63, %v297_v63 }
   0xa   :  { %399 = vmatprep.subr.bf16.mxu0 %v179_v16 }
   0xd   :  { %400 = vmatpush3.bf16.msra.mxu0 %v179_v16 }
   0xe   :  { %401 = vmatprep.subr.bf16.mxu0 %v180_v28 }
  0x11   :  { %402 = vmatpush3.bf16.msra.mxu0 %v180_v28 }
  0x12   :  { %403 = vmatprep.subr.bf16.mxu0 %v181_v31 }
  0x15   :  { %404 = vmatpush3.bf16.msra.mxu0 %v181_v31 }
  0xdb   :  { %v387_v17 = vpop.f32.mrb[0].mxu0 }
  0xdc   :  { %v82_v18 = vpop.f32.mrb[1].mxu0  ;;  %v99_v22 = vpack.c.bf16 %v387_v17, %v387_v17 }
  0xdd   :  { %v388_v19 = vpop.f32.mrb[2].mxu0 }
  0xde   :  { %v85_v20 = vpop.f32.mrb[3].mxu0  ;;  %v115_v24 = vsel %vm44_vm0, %v99_v22, 0 }
  0xdf   :  { %v98_v21 = vpack.c.bf16 %v85_v20, %v82_v18 }
  0xe1   :  { %389 = vmatprep.subr.bf16.mxu1 %v98_v21 }
  0xe2   :  { %390 = vmatpush3.bf16.msra.mxu1 %v98_v21 }
  0xe3   :  { %426 = vmatprep.subr.msk.bf16.mxu1 %vm44_vm0, %v99_v22 }
  0xe6   :  { %392 = vmatpush3.bf16.msra.mxu1 %v115_v24 }
  0xe9   :  { %394 = vmatmul.mubr.msk.bf16.vlgmr.msra.gmra.mrb[0].mxu1 %vm107_vm2, %v97_v25 }
  0xea   :  { %413 = vmatprep.mubr.msk.bf16.mxu1 %vm107_vm2, %v96_v10 }
 0x1bc   :  { %v395_v33 = vpop.f32.mrb[0].mxu1 }
 0x1bd   :  { %v160_v34 = vadd.f32 %v395_v33, %v354_v32  ;;  %v151_v35 = vpop.f32.mrb[1].mxu1 }
 0x1be   :  { %v152_v36 = vadd.f32 %v354_v32, %v151_v35  ;;  %v396_v37 = vpop.f32.mrb[2].mxu1 }
 0x1bf   :  { %v154_v38 = vpop.f32.mrb[3].mxu1  ;;  %v167_v40 = vmax.f32 %v160_v34, 0.0 }
 0x1c0   :  { %v155_v39 = vadd.f32 %v354_v32, %v154_v38  ;;  %v165_v41 = vmax.f32 %v152_v36, 0.0 }
 0x1c1   :  { %v177_v44 = vpack.c.bf16 %v167_v40, %v167_v40 }
 0x1c2   :  { %v166_v42 = vmax.f32 %v155_v39, 0.0 }
 0x1c4   :  { %v176_v43 = vpack.c.bf16 %v166_v42, %v165_v41 }
 0x1c6   :  { %405 = vmatprep.mubr.msk.bf16.mxu0 %vm182_vm3, %v176_v43 }
 0x1c7   :  { %406 = vmatmul.mubr.msk.bf16.vlgmr.msra.gmra.mrb[4].mxu0 %vm182_vm3, %v177_v44 }
 0x29a   :  { %v407_v45 = vpop.f32.mrb[4].mxu0 }
 0x29b   :  { %v223_v46 = vpop.f32.mrb[5].mxu0  ;;  %v238_v50 = vpack.c.bf16 %v407_v45, %v407_v45 }
 0x29c   :  { %v408_v47 = vpop.f32.mrb[6].mxu0 }
 0x29d   :  { %v226_v48 = vpop.f32.mrb[7].mxu0  ;;  %v247_v51 = vsel %vm44_vm0, %v238_v50, 0 }
 0x29e   :  { %v237_v49 = vpack.c.bf16 %v226_v48, %v223_v46 }
 0x2a0   :  { %409 = vmatprep.subr.bf16.mxu1 %v237_v49 }
 0x2a1   :  { %410 = vmatpush3.bf16.msra.mxu1 %v237_v49 }
 0x2a2   :  { %427 = vmatprep.subr.msk.bf16.mxu1 %vm44_vm0, %v238_v50 }
 0x2a5   :  { %412 = vmatpush3.bf16.msra.mxu1 %v247_v51 }
 0x2a6   :  { %417 = vmatprep.subr.bf16.mxu1 %v430_v52 }
 0x2a8   :  { %414 = vmatmul.mubr.msk.bf16.vlgmr.msra.gmra.mrb[4].mxu1 %vm107_vm2, %v97_v25 }
 0x2a9   :  { %421 = vmatprep.mubr.msk.bf16.mxu1 %vm431_vm4, %v430_v52 }
 0x37b   :  { %v415_v53 = vpop.f32.mrb[4].mxu1 }
 0x37c   :  { %v283_v55 = vpop.f32.mrb[5].mxu1  ;;  %v292_v57 = vadd.f32 %v415_v53, %v359_v54 }
 0x37d   :  { %v416_v56 = vpop.f32.mrb[6].mxu1  ;;  %v284_v59 = vadd.f32 %v359_v54, %v283_v55 }
 0x37e   :  { %v286_v58 = vpop.f32.mrb[7].mxu1  ;;  %v300_v62 = vpack.c.bf16 %v292_v57, %v292_v57 }
 0x37f   :  { %v287_v60 = vadd.f32 %v359_v54, %v286_v58 }
 0x380   :  { %v305_v0 = vsel %vm44_vm0, %v300_v62, 0 }
 0x381   :  { %v299_v61 = vpack.c.bf16 %v287_v60, %v284_v59 }
 0x383   :  { %418 = vmatpush3.bf16.msra.mxu1 %v299_v61 }
 0x384   :  { %419 = vmatprep.subr.bf16.mxu1 %v430_v52 }
 0x387   :  { %420 = vmatpush3.bf16.msra.mxu1 %v305_v0 }
 0x38a   :  { %422 = vmatmul.mubr.msk.bf16.vlgmr.msra.gmra.mrb[8].mxu1 %vm107_vm2, %v298_v1 }
 0x45d   :  { %v341_v2 = vpop.f32.mrb[8].mxu1 }
 0x45e   :  { %347 = vst [vmem:[%s548_s7] sm:$0xff] %v341_v2  ;;  %v423_v3 = vpop.f32.mrb[9].mxu1 }
 0x45f   :  { %v344_v4 = vpop.f32.mrb[10].mxu1 }
 0x460   :  { %v424_v5 = vpop.f32.mrb[11].mxu1 }

// kernel: multimodal_forward.2
= control target key start
LH: loop header
LB: loop body
LE: loop exit
PB: predicated region body
PF: predicated region fallthrough
CT: control target
= control target key end

     0   :  { %s3890_s0 = inlined_call_operand.vmem [shape: f32[2,16,48], index: 0, kind: input, shape index: {}]   ;;  %s3891_s1 = inlined_call_operand.vmem [shape: f32[784,16], index: 1, kind: input, shape index: {}]   ;;  %s3892_s2 = inlined_call_operand.vmem [shape: f32[48,32], index: 2, kind: input, shape index: {}]   ;;  %s3893_s3 = inlined_call_operand.vmem [shape: f32[1,32], index: 3, kind: input, shape index: {}, may-alias: {3,5,7,9,13,16}]   ;;  %s3894_s4 = inlined_call_operand.vmem [shape: f32[1,32], index: 4, kind: input, shape index: {}, may-alias: {4,8,15}]   ;;  %s3895_s5 = inlined_call_operand.vmem [shape: f32[1,32], index: 5, kind: input, shape index: {}, may-alias: {3,5,7,9,13,16}]   ;;  %s3896_s6 = inlined_call_operand.vmem [shape: f32[49,32], index: 6, kind: input, shape index: {}]   ;;  %s3897_s7 = inlined_call_operand.vmem [shape: f32[1,32], index: 7, kind: input, shape index: {}, may-alias: {3,5,7,9,13,16}]   ;;  %s3898_s8 = inlined_call_operand.vmem [shape: f32[1,32], index: 8, kind: input, shape index: {}, may-alias: {4,8,15}]   ;;  %s3899_s9 = inlined_call_operand.vmem [shape: f32[1,32], index: 9, kind: input, shape index: {}, may-alias: {3,5,7,9,13,16}]   ;;  %s3900_s10 = inlined_call_operand.vmem [shape: f32[32,128], index: 10, kind: input, shape index: {}]   ;;  %s3901_s11 = inlined_call_operand.vmem [shape: f32[1,128], index: 11, kind: input, shape index: {}]   ;;  %s3902_s12 = inlined_call_operand.vmem [shape: f32[128,32], index: 12, kind: input, shape index: {}]   ;;  %s3903_s13 = inlined_call_operand.vmem [shape: f32[1,32], index: 13, kind: input, shape index: {}, may-alias: {3,5,7,9,13,16}]   ;;  %s3904_s14 = inlined_call_operand.vmem [shape: f32[1,32], index: 14, kind: input, shape index: {}]   ;;  %s3905_s15 = inlined_call_operand.vmem [shape: f32[1,32], index: 15, kind: input, shape index: {}, may-alias: {4,8,15}]   ;;  %s3906_s16 = inlined_call_operand.vmem [shape: f32[1,32], index: 16, kind: input, shape index: {}, may-alias: {3,5,7,9,13,16}]   ;;  %s3907_s17 = inlined_call_operand.vmem [shape: f32[32,128], index: 17, kind: input, shape index: {}]   ;;  %s3908_s18 = inlined_call_operand.vmem [shape: f32[1,128], index: 18, kind: input, shape index: {}]   ;;  %s3909_s19 = inlined_call_operand.hbm [shape: f32[2,1,128], index: 19, kind: output, shape index: {}]  }
   0x1   :  { %3917 = sst [smem:[#allocation10_spill]] %s3890_s0 }
   0x2   :  { %3918 = sst [smem:[#allocation11_spill]] %s3891_s1 }
   0x3   :  { %3919 = sst [smem:[#allocation12_spill]] %s3892_s2 }
   0x4   :  { %3920 = sst [smem:[#allocation13_spill]] %s3893_s3 }
   0x5   :  { %3921 = sst [smem:[#allocation14_spill]] %s3894_s4 }
   0x6   :  { %24 = vsyncpa [#allocation3], 0 }
   0x7   :  { %26 = vsyncpa [#allocation3 + $0x1], 0  ;;  %s2891_s0 = smov 0   ;;  %s2893_s30 = smov 0  }
   0x8   :  { %s2895_s20 = smov 0   ;;  %s2897_s21 = smov 0  }
   0x9 LB: > { %3922 = sst [smem:[#allocation5_spill]] %s2774_s0  ;;  %s2912_s1 = sadd.s32 4294967295, %s2786_s21   ;;  %s2786_s21 = sphi %s2897_s21, %s3936_s21   ;;  %s2782_s20 = sphi %s2895_s20, %s3941_s20   ;;  %s2778_s30 = sphi %s2893_s30, %s3940_s30   ;;  %s2774_s0 = sphi %s2891_s0, %s3939_s0  }
   0xa   : > { %3923 = sst [smem:[#allocation6_spill]] %s2782_s20  ;;  %s2234_s22 = sadd.s32 4294967294, %s2786_s21  }
   0xb   : > { %s2916_s2 = sadd.s32 1, %s2786_s21   ;;  %s443_s23 = sadd.s32 1, %s2782_s20 }
   0xc   : > { %3924 = sst [smem:[#allocation7_spill]] %s2916_s2  ;;  %s440_s24 = ssub.s32 %s2786_s21, %s2916_s2 }
   0xd   : > { %p453_p0 = scmp.ne.s32.totalorder %s2782_s20, %s2778_s30  ;;  %p441_p1 = scmp.eq.s32.totalorder %s440_s24, 0 }
   0xe   : > { %p454_p2 = scmp.eq.s32.totalorder %s2912_s1, 1  ;;  %p459_p3 = scmp.ne.s32.totalorder %s2778_s30, %s2774_s0 }
   0xf   : > { %p460_p4 = scmp.eq.s32.totalorder %s2234_s22, 1  ;;  %p2237_p7 = scmp.ge.s32.totalorder %s2786_s21, 1 }
  0x10   : > { %s2927_s25 = scalar_select %p441_p1, %s2782_s20, %s443_s23  }
  0x11   : > { %p2929_p5 = por %p454_p2, %p453_p0  ;;  %p2933_p6 = por %p460_p4, %p459_p3 }
  0x12   : > { %3925 = sst [smem:[#allocation8_spill]] %s2927_s25  ;;  %p540_p8 = scmp.lt.s32.totalorder %s2786_s21, 3 }
  0x13   : > { %s3927_s26 = scalar_select %p2933_p6, 1, 0 }
  0x14   : > { %p541_p9 = pnand %p2237_p7, %p540_p8 }
  0x15   : > { %3928 = sst [smem:[#allocation9_spill]] %s3927_s26  ;;  %s3929_s29 = sld [smem:[#allocation12_spill]] (!%p541_p9)  ;;  %v2788_v3 = vmov (!%p541_p9), 0.0   ;;  %vm2789_vm0 = vmmov (!%p541_p9), 0   ;;  %vm620_vm1 = vcmask (!%p541_p9), 392192   ;;  %vm667_vm2 = vcmask (!%p541_p9), 261120  }
  0x16   : > { %544 = sbr.rel (%p541_p9) target bundleno = 2359 (0x937), region = 96  ;;  %p595_p10 = scmp.lt.s32.totalorder (!%p541_p9), %s2912_s1, 1  ;;  %2423 = vmatprep.subr.bf16.mxu0 (!%p541_p9), %v2788_v3  ;;  %2429 = vmatprep.mubr.msk.bf16.mxu0 (!%p541_p9), %vm2789_vm0, %v2788_v3  ;;  %v2243_v44 = vld [vmem:[%s3895_s5] ss:$0 sm:$0xff] (!%p541_p9)  ;;  %vm859_vm3 = vcmask (!%p541_p9), 130048  }
  0x17   : > { %2667 = vmatprep.subr.bf16.mxu1 (!%p541_p9), %v2788_v3  ;;  %2515 = vmatprep.mubr.msk.bf16.mxu1 (!%p541_p9), %vm2789_vm0, %v2788_v3  ;;  %s3930_s26 = sld [smem:[#allocation10_spill]] (!%p541_p9)  ;;  %s3931_s28 = sld [smem:[#allocation13_spill]] (!%p541_p9) }
  0x18   : > { %s3932_s4 = sld [smem:[#allocation14_spill]] (!%p541_p9)  ;;  %s3933_s24 = sld [smem:[#allocation11_spill]] (!%p541_p9) }
  0x19   : > { %s593_s20 = sand.u32 (!%p541_p9), 1, %s2778_s30   ;;  %s2350_s23 = sshll.u32 (!%p541_p9), %s2912_s1, 4 }
  0x1a   : > { %s2167_s2 = scalar_lea.sflag (!%p541_p9), [#allocation3], %s593_s20 }
  0x1b   : > { %v603_v0 = vld [vmem:[%s3929_s29] sm:$0xff] (!%p541_p9)  ;;  %v604_v1 = vld [vmem:[%s3929_s29 + $0x8] sm:$0xff] (!%p541_p9)  ;;  %v605_v2 = vld [vmem:[%s3929_s29 + $0x10] sm:$0xff] (!%p541_p9) }
  0x1c   : > { %v610_v4 = vpack.c.bf16 (!%p541_p9), %v604_v1, %v603_v0  ;;  %v606_v5 = vld [vmem:[%s3929_s29 + $0x18] sm:$0xff] (!%p541_p9)  ;;  %v607_v7 = vld [vmem:[%s3929_s29 + $0x20] sm:$0xff] (!%p541_p9)  ;;  %v608_v8 = vld [vmem:[%s3929_s29 + $0x28] sm:$0xff] (!%p541_p9) }
  0x1d   : > { %s596_s27 = scalar_select %p595_p10, %s2912_s1, 1  ;;  %v611_v6 = vpack.c.bf16 %v606_v5, %v605_v2  ;;  %v612_v9 = vpack.c.bf16 %v608_v8, %v607_v7  ;;  %v2240_v13 = vld [vmem:[%s3931_s28] ss:$0 sm:$0xff] }
  0x1e   : > { %2424 = vmatpush3.bf16.msra.mxu0 %v610_v4  ;;  %v2242_v40 = vld [vmem:[%s3932_s4] ss:$0 sm:$0xff]  ;;  %v712_v49 = vld [vmem:[%s3933_s24 + $0x8] sm:$0xff]  ;;  %v713_v55 = vld [vmem:[%s3933_s24 + $0x10] sm:$0xff] }
  0x1f   : > { %2425 = vmatprep.subr.bf16.mxu0 %v2788_v3  ;;  %s2353_s22 = sshll.u32 %s596_s27, 4  ;;  %v711_v46 = vld [vmem:[%s3933_s24] sm:$0xff]  ;;  %v752_v51 = vld [vmem:[%s3933_s24 + $0x148] sm:$0xff]  ;;  %v714_v56 = vld [vmem:[%s3933_s24 + $0x18] sm:$0xff]  ;;  %s594_s27 = scalar_lea.vmem [#allocation2], %s593_s20 }
  0x20   : > { %s599_s0 = scalar_lea.vmem %s3930_s26, %s2353_s22  ;;  %v751_v50 = vld [vmem:[%s3933_s24 + $0x140] sm:$0xff]  ;;  %v809_v53 = vpack.c.bf16 %v712_v49, %v711_v46  ;;  %v753_v57 = vld [vmem:[%s3933_s24 + $0x150] sm:$0xff]  ;;  %v754_v58 = vld [vmem:[%s3933_s24 + $0x158] sm:$0xff]  ;;  %v810_v59 = vpack.c.bf16 %v714_v56, %v713_v55  ;;  %s2179_s25 = sshll.u32 %s594_s27, 4  ;;  %s3850_s25 = int_to_ptr.vmem [resolvable:$true] %s2179_s25 }
  0x21   : > { %v601_v10 = vld [vmem:[%s599_s0] sm:$0xff]  ;;  %v602_v11 = vld [vmem:[%s599_s0 + $0x8] sm:$0xff]  ;;  %v829_v54 = vpack.c.bf16 %v752_v51, %v751_v50  ;;  %v830_v60 = vpack.c.bf16 %v754_v58, %v753_v57  ;;  %v717_v4 = vld [vmem:[%s3933_s24 + $0x30] sm:$0xff]  ;;  %s3848_s26 = scalar_lea.hbm %s3909_s19, %s2350_s23  ;;  %s2724_s1 = scalar_lea.vmem %s3850_s25, 16 }
  0x22   : > { %2426 = vmatpush3.bf16.msra.mxu0 %v611_v6  ;;  %v609_v12 = vpack.c.bf16 %v602_v11, %v601_v10  ;;  %v715_v61 = vld [vmem:[%s3933_s24 + $0x20] sm:$0xff]  ;;  %v716_v62 = vld [vmem:[%s3933_s24 + $0x28] sm:$0xff]  ;;  %v718_v5 = vld [vmem:[%s3933_s24 + $0x38] sm:$0xff]  ;;  %p2725_p11 = scmp.ne.s32.totalorder %s3850_s25, %s2724_s1  ;;  %s2790_s22 = smov [#allocation2]  }
  0x23   : > { %2427 = vmatprep.subr.bf16.mxu0 %v2788_v3  ;;  %v755_v63 = vld [vmem:[%s3933_s24 + $0x160] sm:$0xff]  ;;  %v756_v0 = vld [vmem:[%s3933_s24 + $0x168] sm:$0xff]  ;;  %v811_v1 = vpack.c.bf16 %v716_v62, %v715_v61  ;;  %v757_v6 = vld [vmem:[%s3933_s24 + $0x170] sm:$0xff]  ;;  %v812_v8 = vpack.c.bf16 %v718_v5, %v717_v4  ;;  %s2728_s4 = sshll.u32 %s2790_s22, 4  ;;  %s2729_s4 = int_to_ptr.vmem [resolvable:$false] %s2728_s4 }
  0x24   : > { %v831_v2 = vpack.c.bf16 %v756_v0, %v755_v63  ;;  %v758_v7 = vld [vmem:[%s3933_s24 + $0x178] sm:$0xff]  ;;  %v719_v10 = vld [vmem:[%s3933_s24 + $0x40] sm:$0xff]  ;;  %v720_v11 = vld [vmem:[%s3933_s24 + $0x48] sm:$0xff]  ;;  %p2726_p12 = pnand %p2725_p11, %p2929_p5  ;;  %s2730_s28 = scalar_lea.vmem %s2729_s4, 32 }
  0x25   : > { %v731_v46 = vld [vmem:[%s3933_s24 + $0xa0] sm:$0xff]  ;;  %v732_v49 = vld [vmem:[%s3933_s24 + $0xa8] sm:$0xff]  ;;  %v734_v55 = vld [vmem:[%s3933_s24 + $0xb8] sm:$0xff]  ;;  %p2731_p0 = scmp.lt.s32.totalorder %s3850_s25, %s2729_s4  ;;  %p2732_p1 = scmp.lt.s32.totalorder %s2730_s28, %s2724_s1 }
  0x26   : > { %2428 = vmatpush3.bf16.msra.mxu0 %v612_v9  ;;  %v832_v9 = vpack.c.bf16 %v758_v7, %v757_v6  ;;  %v771_v50 = vld [vmem:[%s3933_s24 + $0x1e0] sm:$0xff]  ;;  %v772_v51 = vld [vmem:[%s3933_s24 + $0x1e8] sm:$0xff]  ;;  %v773_v56 = vld [vmem:[%s3933_s24 + $0x1f0] sm:$0xff]  ;;  %p2727_p13 = pneg %p2726_p12 }
  0x27   : > { %2433 = vmatprep.subr.bf16.mxu0 %v2788_v3  ;;  %v774_v57 = vld [vmem:[%s3933_s24 + $0x1f8] sm:$0xff]  ;;  %v736_v61 = vld [vmem:[%s3933_s24 + $0xc8] sm:$0xff]  ;;  %v775_v62 = vld [vmem:[%s3933_s24 + $0x200] sm:$0xff]  ;;  %p2733_p2 = por %p2732_p1, %p2731_p0 }
  0x28   : > { %v776_v63 = vld [vmem:[%s3933_s24 + $0x208] sm:$0xff]  ;;  %v738_v4 = vld [vmem:[%s3933_s24 + $0xd8] sm:$0xff]  ;;  %v777_v5 = vld [vmem:[%s3933_s24 + $0x210] sm:$0xff] }
  0x29   : > { %2430 = vmatmul.mubr.msk.bf16.vlgmr.msra.gmra.mrb[0].mxu0 %vm620_vm1, %v609_v12  ;;  %v759_v12 = vld [vmem:[%s3933_s24 + $0x180] sm:$0xff]  ;;  %v778_v6 = vld [vmem:[%s3933_s24 + $0x218] sm:$0xff]  ;;  %p2734_p3 = pnand %p2733_p2, %p2727_p13 }
  0x2a   : > { %2435 = vmatprep.mubr.msk.bf16.mxu0 %vm2789_vm0, %v2788_v3 }
  0xfc   : > { %v658_v14 = vpop.f32.mrb[0].mxu0 }
  0xfd   : > { %v659_v15 = vadd.f32 %v2240_v13, %v658_v14  ;;  %v2431_v16 = vpop.f32.mrb[1].mxu0  ;;  %v813_v14 = vpack.c.bf16 %v720_v11, %v719_v10  ;;  %v740_v10 = vld [vmem:[%s3933_s24 + $0xe8] sm:$0xff]  ;;  %v779_v11 = vld [vmem:[%s3933_s24 + $0x220] sm:$0xff] }
  0xfe   : > { %v661_v17 = vpop.f32.mrb[2].mxu0  ;;  %v721_v16 = vld [vmem:[%s3933_s24 + $0x50] sm:$0xff] }
  0xff   : > { %v662_v18 = vadd.f32 %v2240_v13, %v661_v17  ;;  %v2432_v19 = vpop.f32.mrb[3].mxu0  ;;  %v668_v20 = vsel %vm667_vm2, %v659_v15, 0.0  ;;  %v760_v13 = vld [vmem:[%s3933_s24 + $0x188] sm:$0xff]  ;;  %v722_v17 = vld [vmem:[%s3933_s24 + $0x58] sm:$0xff] }
 0x100   : > { %669 = vadd.xlane.f32.xlu0 %v668_v20  ;;  %v762_v19 = vld [vmem:[%s3933_s24 + $0x198] sm:$0xff]  ;;  %v814_v20 = vpack.c.bf16 %v722_v17, %v721_v16  ;;  %v781_v17 = vld [vmem:[%s3933_s24 + $0x230] sm:$0xff] }
 0x101   : > { %v671_v21 = vsel %vm667_vm2, %v662_v18, 0.0  ;;  %v742_v16 = vld [vmem:[%s3933_s24 + $0xf8] sm:$0xff] }
 0x104   : > { %672 = vadd.xlane.f32.xlu0 %v671_v21 }
 0x18d   : > { %v670_v22 = vpop.xlane.xlu0 %669 }
 0x18e   : > { %v675_v23 = vmul.f32 0.03125, %v670_v22  ;;  %v723_v22 = vld [vmem:[%s3933_s24 + $0x60] sm:$0xff] }
 0x190   : > { %v677_v24 = vsub.f32 %v659_v15, %v675_v23  ;;  %v833_v15 = vpack.c.bf16 %v760_v13, %v759_v12  ;;  %v724_v23 = vld [vmem:[%s3933_s24 + $0x68] sm:$0xff] }
 0x191   : > { %v673_v25 = vpop.xlane.xlu0 %672  ;;  %v780_v12 = vld [vmem:[%s3933_s24 + $0x228] sm:$0xff] }
 0x192   : > { %v676_v26 = vmul.f32 0.03125, %v673_v25  ;;  %v679_v27 = vmul.f32 %v677_v24, %v677_v24  ;;  %v764_v25 = vld [vmem:[%s3933_s24 + $0x1a8] sm:$0xff] }
 0x194   : > { %v678_v28 = vsub.f32 %v662_v18, %v676_v26  ;;  %v681_v29 = vsel %vm667_vm2, %v679_v27, 0.0  ;;  %v761_v18 = vld [vmem:[%s3933_s24 + $0x190] sm:$0xff]  ;;  %v815_v26 = vpack.c.bf16 %v724_v23, %v723_v22  ;;  %v744_v22 = vld [vmem:[%s3933_s24 + $0x108] sm:$0xff]  ;;  %v783_v23 = vld [vmem:[%s3933_s24 + $0x240] sm:$0xff] }
 0x195   : > { %682 = vadd.xlane.f32.xlu1 %v681_v29  ;;  %v834_v21 = vpack.c.bf16 %v762_v19, %v761_v18  ;;  %v726_v29 = vld [vmem:[%s3933_s24 + $0x78] sm:$0xff] }
 0x196   : > { %v680_v30 = vmul.f32 %v678_v28, %v678_v28  ;;  %v782_v18 = vld [vmem:[%s3933_s24 + $0x238] sm:$0xff] }
 0x198   : > { %v684_v31 = vsel %vm667_vm2, %v680_v30, 0.0  ;;  %v765_v30 = vld [vmem:[%s3933_s24 + $0x1b0] sm:$0xff] }
 0x199   : > { %685 = vadd.xlane.f32.xlu1 %v684_v31  ;;  %v766_v31 = vld [vmem:[%s3933_s24 + $0x1b8] sm:$0xff] }
 0x222   : > { %v683_v32 = vpop.xlane.xlu1 %682 }
 0x223   : > { %v687_v33 = vmul.f32 0.03125, %v683_v32 }
 0x225   : > { %v689_v34 = vadd.f32 1e-06, %v687_v33  ;;  %v836_v33 = vpack.c.bf16 %v766_v31, %v765_v30  ;;  %v786_v30 = vld [vmem:[%s3933_s24 + $0x258] sm:$0xff] }
 0x226   : > { %v686_v35 = vpop.xlane.xlu1 %685 }
 0x227   : > { %2710 = vrsqrt.f32 %v689_v34  ;;  %v688_v36 = vmul.f32 0.03125, %v686_v35  ;;  %v727_v34 = vld [vmem:[%s3933_s24 + $0x80] sm:$0xff]  ;;  %v728_v35 = vld [vmem:[%s3933_s24 + $0x88] sm:$0xff] }
 0x229   : > { %v690_v37 = vadd.f32 1e-06, %v688_v36  ;;  %v767_v36 = vld [vmem:[%s3933_s24 + $0x1c0] sm:$0xff] }
 0x22b   : > { %2712 = vrsqrt.f32 %v690_v37  ;;  %v768_v37 = vld [vmem:[%s3933_s24 + $0x1c8] sm:$0xff] }
 0x231   : > { %v2711_v38 = vpop.eup %2710 }
 0x232   : > { %v693_v39 = vmul.f32 %v2711_v38, %v677_v24  ;;  %v763_v24 = vld [vmem:[%s3933_s24 + $0x1a0] sm:$0xff]  ;;  %v817_v38 = vpack.c.bf16 %v728_v35, %v727_v34  ;;  %v748_v34 = vld [vmem:[%s3933_s24 + $0x128] sm:$0xff] }
 0x233   : > { %v835_v27 = vpack.c.bf16 %v764_v25, %v763_v24  ;;  %v784_v24 = vld [vmem:[%s3933_s24 + $0x248] sm:$0xff]  ;;  %v787_v35 = vld [vmem:[%s3933_s24 + $0x260] sm:$0xff] }
 0x234   : > { %v701_v43 = vmul.f32 %v2242_v40, %v693_v39  ;;  %v837_v39 = vpack.c.bf16 %v768_v37, %v767_v36  ;;  %v788_v36 = vld [vmem:[%s3933_s24 + $0x268] sm:$0xff] }
 0x235   : > { %v2713_v41 = vpop.eup %2712 }
 0x236   : > { %v694_v42 = vmul.f32 %v2713_v41, %v678_v28  ;;  %v2989_v47 = vadd.f32 %v2243_v44, %v701_v43  ;;  %v725_v28 = vld [vmem:[%s3933_s24 + $0x70] sm:$0xff]  ;;  %v730_v41 = vld [vmem:[%s3933_s24 + $0x98] sm:$0xff] }
 0x237   : > { %v816_v32 = vpack.c.bf16 %v726_v29, %v725_v28  ;;  %v770_v43 = vld [vmem:[%s3933_s24 + $0x1d8] sm:$0xff]  ;;  %v785_v29 = vld [vmem:[%s3933_s24 + $0x250] sm:$0xff] }
 0x238   : > { %v702_v45 = vmul.f32 %v2242_v40, %v694_v42  ;;  %v729_v40 = vld [vmem:[%s3933_s24 + $0x90] sm:$0xff]  ;;  %v746_v28 = vld [vmem:[%s3933_s24 + $0x118] sm:$0xff] }
 0x239   : > { %v769_v42 = vld [vmem:[%s3933_s24 + $0x1d0] sm:$0xff] }
 0x23a   : > { %v2991_v48 = vadd.f32 %v2243_v44, %v702_v45  ;;  %v818_v44 = vpack.c.bf16 %v730_v41, %v729_v40  ;;  %v838_v45 = vpack.c.bf16 %v770_v43, %v769_v42  ;;  %v750_v40 = vld [vmem:[%s3933_s24 + $0x138] sm:$0xff]  ;;  %v789_v41 = vld [vmem:[%s3933_s24 + $0x270] sm:$0xff] }
 0x23b   : > { %v790_v42 = vld [vmem:[%s3933_s24 + $0x278] sm:$0xff] }
 0x23c   : > { %v858_v52 = vpack.c.bf16 %v2991_v48, %v2989_v47 }
 0x23e   : > { %2434 = vmatpush3.bf16.msra.mxu0 %v858_v52  ;;  %2668 = vmatpush3.bf16.msra.mxu1 %v858_v52  ;;  %v819_v52 = vpack.c.bf16 %v732_v49, %v731_v46  ;;  %v792_v46 = vld [vmem:[%s3933_s24 + $0x288] sm:$0xff] }
 0x23f   : > { %2631 = vmatprep.subr.bf16.mxu0 %v2788_v3 }
 0x241   : > { %2436 = vmatmul.mubr.msk.bf16.vlgmr.msra.gmra.mrb[4].mxu0 %vm859_vm3, %v809_v53  ;;  %2516 = vmatmul.mubr.msk.bf16.vlgmr.msra.gmra.mrb[0].mxu1 %vm859_vm3, %v829_v54  ;;  %v839_v53 = vpack.c.bf16 %v772_v51, %v771_v50  ;;  %v733_v54 = vld [vmem:[%s3933_s24 + $0xb0] sm:$0xff]  ;;  %v794_v51 = vld [vmem:[%s3933_s24 + $0x298] sm:$0xff] }
 0x242   : > { %2439 = vmatprep.mubr.msk.bf16.mxu0 %vm2789_vm0, %v2788_v3  ;;  %2519 = vmatprep.mubr.msk.bf16.mxu1 %vm2789_vm0, %v2788_v3  ;;  %v820_v58 = vpack.c.bf16 %v734_v55, %v733_v54  ;;  %v793_v50 = vld [vmem:[%s3933_s24 + $0x290] sm:$0xff]  ;;  %v796_v54 = vld [vmem:[%s3933_s24 + $0x2a8] sm:$0xff] }
 0x249   : > { %2440 = vmatmul.mubr.msk.bf16.gmra.mrb[8].mxu0 %vm859_vm3, %v810_v59  ;;  %2520 = vmatmul.mubr.msk.bf16.gmra.mrb[4].mxu1 %vm859_vm3, %v830_v60  ;;  %v840_v59 = vpack.c.bf16 %v774_v57, %v773_v56  ;;  %v735_v60 = vld [vmem:[%s3933_s24 + $0xc0] sm:$0xff]  ;;  %v797_v56 = vld [vmem:[%s3933_s24 + $0x2b0] sm:$0xff]  ;;  %v798_v57 = vld [vmem:[%s3933_s24 + $0x2b8] sm:$0xff] }
 0x24a   : > { %2443 = vmatprep.mubr.msk.bf16.mxu0 %vm2789_vm0, %v2788_v3  ;;  %2523 = vmatprep.mubr.msk.bf16.mxu1 %vm2789_vm0, %v2788_v3  ;;  %v821_v0 = vpack.c.bf16 %v736_v61, %v735_v60  ;;  %v800_v60 = vld [vmem:[%s3933_s24 + $0x2c8] sm:$0xff] }
 0x251   : > { %2444 = vmatmul.mubr.msk.bf16.gmra.mrb[12].mxu0 %vm859_vm3, %v811_v1  ;;  %2524 = vmatmul.mubr.msk.bf16.gmra.mrb[8].mxu1 %vm859_vm3, %v831_v2  ;;  %v841_v1 = vpack.c.bf16 %v776_v63, %v775_v62  ;;  %v737_v2 = vld [vmem:[%s3933_s24 + $0xd0] sm:$0xff]  ;;  %v802_v63 = vld [vmem:[%s3933_s24 + $0x2d8] sm:$0xff] }
 0x252   : > { %2447 = vmatprep.mubr.msk.bf16.mxu0 %vm2789_vm0, %v2788_v3  ;;  %2527 = vmatprep.mubr.msk.bf16.mxu1 %vm2789_vm0, %v2788_v3  ;;  %v822_v7 = vpack.c.bf16 %v738_v4, %v737_v2  ;;  %v801_v62 = vld [vmem:[%s3933_s24 + $0x2d0] sm:$0xff]  ;;  %v804_v2 = vld [vmem:[%s3933_s24 + $0x2e8] sm:$0xff] }
 0x259   : > { %2448 = vmatmul.mubr.msk.bf16.gmra.mrb[16].mxu0 %vm859_vm3, %v812_v8  ;;  %2528 = vmatmul.mubr.msk.bf16.gmra.mrb[12].mxu1 %vm859_vm3, %v832_v9  ;;  %v842_v8 = vpack.c.bf16 %v778_v6, %v777_v5  ;;  %v739_v9 = vld [vmem:[%s3933_s24 + $0xe0] sm:$0xff]  ;;  %v805_v5 = vld [vmem:[%s3933_s24 + $0x2f0] sm:$0xff]  ;;  %v806_v6 = vld [vmem:[%s3933_s24 + $0x2f8] sm:$0xff] }
 0x25a   : > { %2451 = vmatprep.mubr.msk.bf16.mxu0 %vm2789_vm0, %v2788_v3  ;;  %2531 = vmatprep.mubr.msk.bf16.mxu1 %vm2789_vm0, %v2788_v3  ;;  %v823_v13 = vpack.c.bf16 %v740_v10, %v739_v9  ;;  %v856_v10 = vpack.c.bf16 %v806_v6, %v805_v5 }
 0x261   : > { %2452 = vmatmul.mubr.msk.bf16.gmra.mrb[20].mxu0 %vm859_vm3, %v813_v14  ;;  %2532 = vmatmul.mubr.msk.bf16.gmra.mrb[16].mxu1 %vm859_vm3, %v833_v15  ;;  %v843_v14 = vpack.c.bf16 %v780_v12, %v779_v11  ;;  %v741_v15 = vld [vmem:[%s3933_s24 + $0xf0] sm:$0xff] }
 0x262   : > { %2455 = vmatprep.mubr.msk.bf16.mxu0 %vm2789_vm0, %v2788_v3  ;;  %2535 = vmatprep.mubr.msk.bf16.mxu1 %vm2789_vm0, %v2788_v3  ;;  %v824_v19 = vpack.c.bf16 %v742_v16, %v741_v15  ;;  %v2293_v16 = vld [vmem:[%s3896_s6] ss:$0 sm:$0xff] }
 0x269   : > { %2456 = vmatmul.mubr.msk.bf16.gmra.mrb[24].mxu0 %vm859_vm3, %v814_v20  ;;  %2536 = vmatmul.mubr.msk.bf16.gmra.mrb[20].mxu1 %vm859_vm3, %v834_v21  ;;  %v844_v20 = vpack.c.bf16 %v782_v18, %v781_v17  ;;  %v743_v21 = vld [vmem:[%s3933_s24 + $0x100] sm:$0xff] }
 0x26a   : > { %2459 = vmatprep.mubr.msk.bf16.mxu0 %vm2789_vm0, %v2788_v3  ;;  %2539 = vmatprep.mubr.msk.bf16.mxu1 %vm2789_vm0, %v2788_v3  ;;  %v825_v25 = vpack.c.bf16 %v744_v22, %v743_v21  ;;  %v2294_v17 = vld [vmem:[%s3896_s6 + $0x1] ss:$0 sm:$0xff] }
 0x26b   : > { %v807_v18 = vld [vmem:[%s3933_s24 + $0x300] sm:$0xff] }
 0x271   : > { %2460 = vmatmul.mubr.msk.bf16.gmra.mrb[28].mxu0 %vm859_vm3, %v815_v26  ;;  %2540 = vmatmul.mubr.msk.bf16.gmra.mrb[24].mxu1 %vm859_vm3, %v835_v27  ;;  %v845_v26 = vpack.c.bf16 %v784_v24, %v783_v23  ;;  %v745_v27 = vld [vmem:[%s3933_s24 + $0x110] sm:$0xff] }
 0x272   : > { %2463 = vmatprep.mubr.msk.bf16.mxu0 %vm2789_vm0, %v2788_v3  ;;  %2543 = vmatprep.mubr.msk.bf16.mxu1 %vm2789_vm0, %v2788_v3  ;;  %v826_v31 = vpack.c.bf16 %v746_v28, %v745_v27 }
 0x279   : > { %2464 = vmatmul.mubr.msk.bf16.gmra.mrb[32].mxu0 %vm859_vm3, %v816_v32  ;;  %2544 = vmatmul.mubr.msk.bf16.gmra.mrb[28].mxu1 %vm859_vm3, %v836_v33  ;;  %v846_v32 = vpack.c.bf16 %v786_v30, %v785_v29  ;;  %v747_v33 = vld [vmem:[%s3933_s24 + $0x120] sm:$0xff] }
 0x27a   : > { %2467 = vmatprep.mubr.msk.bf16.mxu0 %vm2789_vm0, %v2788_v3  ;;  %2547 = vmatprep.mubr.msk.bf16.mxu1 %vm2789_vm0, %v2788_v3  ;;  %v827_v37 = vpack.c.bf16 %v748_v34, %v747_v33 }
 0x281   : > { %2468 = vmatmul.mubr.msk.bf16.gmra.mrb[36].mxu0 %vm859_vm3, %v817_v38  ;;  %2548 = vmatmul.mubr.msk.bf16.gmra.mrb[32].mxu1 %vm859_vm3, %v837_v39  ;;  %v847_v38 = vpack.c.bf16 %v788_v36, %v787_v35  ;;  %v749_v39 = vld [vmem:[%s3933_s24 + $0x130] sm:$0xff]  ;;  %v2295_v35 = vld [vmem:[%s3896_s6 + $0x2] ss:$0 sm:$0xff] }
 0x282   : > { %2471 = vmatprep.mubr.msk.bf16.mxu0 %vm2789_vm0, %v2788_v3  ;;  %2551 = vmatprep.mubr.msk.bf16.mxu1 %vm2789_vm0, %v2788_v3  ;;  %v828_v43 = vpack.c.bf16 %v750_v40, %v749_v39 }
 0x289   : > { %2472 = vmatmul.mubr.msk.bf16.gmra.mrb[40].mxu0 %vm859_vm3, %v818_v44  ;;  %2552 = vmatmul.mubr.msk.bf16.gmra.mrb[36].mxu1 %vm859_vm3, %v838_v45  ;;  %v848_v44 = vpack.c.bf16 %v790_v42, %v789_v41  ;;  %v791_v45 = vld [vmem:[%s3933_s24 + $0x280] sm:$0xff] }
 0x28a   : > { %2475 = vmatprep.mubr.msk.bf16.mxu0 %vm2789_vm0, %v2788_v3  ;;  %2555 = vmatprep.mubr.msk.bf16.mxu1 %vm2789_vm0, %v2788_v3  ;;  %v849_v49 = vpack.c.bf16 %v792_v46, %v791_v45 }
 0x291   : > { %2476 = vmatmul.mubr.msk.bf16.gmra.mrb[44].mxu0 %vm859_vm3, %v819_v52  ;;  %2556 = vmatmul.mubr.msk.bf16.gmra.mrb[40].mxu1 %vm859_vm3, %v839_v53  ;;  %v850_v52 = vpack.c.bf16 %v794_v51, %v793_v50  ;;  %v795_v53 = vld [vmem:[%s3933_s24 + $0x2a0] sm:$0xff] }
 0x292   : > { %2479 = vmatprep.mubr.msk.bf16.mxu0 %vm2789_vm0, %v2788_v3  ;;  %2559 = vmatprep.mubr.msk.bf16.mxu1 %vm2789_vm0, %v2788_v3  ;;  %v851_v55 = vpack.c.bf16 %v796_v54, %v795_v53  ;;  %v2296_v50 = vld [vmem:[%s3896_s6 + $0x3] ss:$0 sm:$0xff] }
 0x299   : > { %2480 = vmatmul.mubr.msk.bf16.gmra.mrb[48].mxu0 %vm859_vm3, %v820_v58  ;;  %2560 = vmatmul.mubr.msk.bf16.gmra.mrb[44].mxu1 %vm859_vm3, %v840_v59  ;;  %v852_v58 = vpack.c.bf16 %v798_v57, %v797_v56  ;;  %v799_v59 = vld [vmem:[%s3933_s24 + $0x2c0] sm:$0xff] }
 0x29a   : > { %2483 = vmatprep.mubr.msk.bf16.mxu0 %vm2789_vm0, %v2788_v3  ;;  %2563 = vmatprep.mubr.msk.bf16.mxu1 %vm2789_vm0, %v2788_v3  ;;  %v853_v61 = vpack.c.bf16 %v800_v60, %v799_v59 }
 0x2a1   : > { %2484 = vmatmul.mubr.msk.bf16.gmra.mrb[52].mxu0 %vm859_vm3, %v821_v0  ;;  %2564 = vmatmul.mubr.msk.bf16.gmra.mrb[48].mxu1 %vm859_vm3, %v841_v1  ;;  %v854_v0 = vpack.c.bf16 %v802_v63, %v801_v62  ;;  %v803_v1 = vld [vmem:[%s3933_s24 + $0x2e0] sm:$0xff] }
 0x2a2   : > { %2487 = vmatprep.mubr.msk.bf16.mxu0 %vm2789_vm0, %v2788_v3  ;;  %2567 = vmatprep.mubr.msk.bf16.mxu1 %vm2789_vm0, %v2788_v3  ;;  %v855_v4 = vpack.c.bf16 %v804_v2, %v803_v1  ;;  %v2297_v63 = vld [vmem:[%s3896_s6 + $0x4] ss:$0 sm:$0xff] }
 0x2a9   : > { %2488 = vmatmul.mubr.msk.bf16.gmra.mrb[56].mxu0 %vm859_vm3, %v822_v7  ;;  %2568 = vmatmul.mubr.msk.bf16.gmra.mrb[52].mxu1 %vm859_vm3, %v842_v8 }
 0x2aa   : > { %2491 = vmatprep.mubr.msk.bf16.mxu0 %vm2789_vm0, %v2788_v3  ;;  %2571 = vmatprep.mubr.msk.bf16.mxu1 %vm2789_vm0, %v2788_v3 }
 0x2b1   : > { %2492 = vmatmul.mubr.msk.bf16.gmra.mrb[60].mxu0 %vm859_vm3, %v823_v13  ;;  %2572 = vmatmul.mubr.msk.bf16.gmra.mrb[56].mxu1 %vm859_vm3, %v843_v14 }
 0x2b2   : > { %2495 = vmatprep.mubr.msk.bf16.mxu0 %vm2789_vm0, %v2788_v3  ;;  %2575 = vmatprep.mubr.msk.bf16.mxu1 %vm2789_vm0, %v2788_v3 }
 0x2b9   : > { %2496 = vmatmul.mubr.msk.bf16.gmra.mrb[64].mxu0 %vm859_vm3, %v824_v19  ;;  %2576 = vmatmul.mubr.msk.bf16.gmra.mrb[60].mxu1 %vm859_vm3, %v844_v20  ;;  %v808_v19 = vld [vmem:[%s3933_s24 + $0x308] sm:$0xff] }
 0x2ba   : > { %2499 = vmatprep.mubr.msk.bf16.mxu0 %vm2789_vm0, %v2788_v3  ;;  %2579 = vmatprep.mubr.msk.bf16.mxu1 %vm2789_vm0, %v2788_v3  ;;  %v857_v27 = vpack.c.bf16 %v808_v19, %v807_v18 }
 0x2c1   : > { %2500 = vmatmul.mubr.msk.bf16.gmra.mrb[68].mxu0 %vm859_vm3, %v825_v25  ;;  %2580 = vmatmul.mubr.msk.bf16.gmra.mrb[64].mxu1 %vm859_vm3, %v845_v26 }
 0x2c2   : > { %2503 = vmatprep.mubr.msk.bf16.mxu0 %vm2789_vm0, %v2788_v3  ;;  %2583 = vmatprep.mubr.msk.bf16.mxu1 %vm2789_vm0, %v2788_v3 }
 0x2c9   : > { %2504 = vmatmul.mubr.msk.bf16.gmra.mrb[72].mxu0 %vm859_vm3, %v826_v31  ;;  %2584 = vmatmul.mubr.msk.bf16.gmra.mrb[68].mxu1 %vm859_vm3, %v846_v32 }
 0x2ca   : > { %2507 = vmatprep.mubr.msk.bf16.mxu0 %vm2789_vm0, %v2788_v3  ;;  %2587 = vmatprep.mubr.msk.bf16.mxu1 %vm2789_vm0, %v2788_v3 }
 0x2d1   : > { %2508 = vmatmul.mubr.msk.bf16.gmra.mrb[76].mxu0 %vm859_vm3, %v827_v37  ;;  %2588 = vmatmul.mubr.msk.bf16.gmra.mrb[72].mxu1 %vm859_vm3, %v847_v38 }
 0x2d2   : > { %2511 = vmatprep.mubr.msk.bf16.mxu0 %vm2789_vm0, %v2788_v3  ;;  %2591 = vmatprep.mubr.msk.bf16.mxu1 %vm2789_vm0, %v2788_v3 }
 0x2d9   : > { %2512 = vmatmul.mubr.msk.bf16.gmra.mrb[80].mxu0 %vm859_vm3, %v828_v43  ;;  %2592 = vmatmul.mubr.msk.bf16.gmra.mrb[76].mxu1 %vm859_vm3, %v848_v44 }
 0x2da   : > { %2595 = vmatprep.mubr.msk.bf16.mxu1 %vm2789_vm0, %v2788_v3  ;;  %2635 = vmatprep.mubr.msk.bf16.mxu0 %vm2789_vm0, %v2788_v3 }
 0x2e1   : > { %2596 = vmatmul.mubr.msk.bf16.gmra.mrb[80].mxu1 %vm859_vm3, %v849_v49 }
 0x2e2   : > { %2599 = vmatprep.mubr.msk.bf16.mxu1 %vm2789_vm0, %v2788_v3 }
 0x2e9   : > { %2600 = vmatmul.mubr.msk.bf16.gmra.mrb[84].mxu1 %vm859_vm3, %v850_v52 }
 0x2ea   : > { %2603 = vmatprep.mubr.msk.bf16.mxu1 %vm2789_vm0, %v2788_v3 }
 0x2f1   : > { %2604 = vmatmul.mubr.msk.bf16.gmra.mrb[88].mxu1 %vm859_vm3, %v851_v55 }
 0x2f2   : > { %2607 = vmatprep.mubr.msk.bf16.mxu1 %vm2789_vm0, %v2788_v3 }
 0x2f9   : > { %2608 = vmatmul.mubr.msk.bf16.gmra.mrb[92].mxu1 %vm859_vm3, %v852_v58 }
 0x2fa   : > { %2611 = vmatprep.mubr.msk.bf16.mxu1 %vm2789_vm0, %v2788_v3 }
 0x301   : > { %2612 = vmatmul.mubr.msk.bf16.gmra.mrb[96].mxu1 %vm859_vm3, %v853_v61 }
 0x302   : > { %2615 = vmatprep.mubr.msk.bf16.mxu1 %vm2789_vm0, %v2788_v3 }
 0x309   : > { %2616 = vmatmul.mubr.msk.bf16.gmra.mrb[100].mxu1 %vm859_vm3, %v854_v0 }
 0x30a   : > { %2619 = vmatprep.mubr.msk.bf16.mxu1 %vm2789_vm0, %v2788_v3 }
 0x311   : > { %2620 = vmatmul.mubr.msk.bf16.gmra.mrb[104].mxu1 %vm859_vm3, %v855_v4 }
 0x312   : > { %2623 = vmatprep.mubr.msk.bf16.mxu1 %vm2789_vm0, %v2788_v3 }
 0x314   : > { %v3422_v7 = vpop.f32.mrb[0].mxu1  ;;  %v1041_v8 = vpop.f32.mrb[4].mxu0 }
 0x315   : > { %v2517_v9 = vpop.f32.mrb[1].mxu1  ;;  %v2437_v11 = vpop.f32.mrb[5].mxu0  ;;  %v1437_v20 = vmul.f32 %v2293_v16, %v1041_v8 }
 0x316   : > { %v3424_v12 = vpop.f32.mrb[2].mxu1  ;;  %v1044_v13 = vpop.f32.mrb[6].mxu0 }
 0x317   : > { %v2518_v14 = vpop.f32.mrb[3].mxu1  ;;  %v2438_v15 = vpop.f32.mrb[7].mxu0  ;;  %v1438_v24 = vmul.f32 %v2293_v16, %v1044_v13 }
 0x318   : > { %v2298_v15 = vld [vmem:[%s3896_s6 + $0x5] ss:$0 sm:$0xff] }
 0x319   : > { %2624 = vmatmul.mubr.msk.bf16.gmra.mrb[108].mxu1 %vm859_vm3, %v856_v10 }
 0x31a   : > { %2627 = vmatprep.mubr.msk.bf16.mxu1 %vm2789_vm0, %v2788_v3 }
 0x31c   : > { %v3441_v21 = vpop.f32.mrb[4].mxu1  ;;  %v1049_v22 = vpop.f32.mrb[8].mxu0 }
 0x31d   : > { %v2521_v23 = vpop.f32.mrb[5].mxu1  ;;  %v1446_v25 = vmul.f32 %v2294_v17, %v1049_v22  ;;  %v2441_v26 = vpop.f32.mrb[9].mxu0 }
 0x31e   : > { %v3443_v28 = vpop.f32.mrb[6].mxu1  ;;  %v1052_v29 = vpop.f32.mrb[10].mxu0 }
 0x31f   : > { %v2522_v30 = vpop.f32.mrb[7].mxu1  ;;  %v1448_v31 = vadd.f32 %v1446_v25, %v1437_v20  ;;  %v1447_v32 = vmul.f32 %v2294_v17, %v1052_v29  ;;  %v2442_v33 = vpop.f32.mrb[11].mxu0 }
 0x320   : > { %v2299_v30 = vld [vmem:[%s3896_s6 + $0x6] ss:$0 sm:$0xff] }
 0x321   : > { %2628 = vmatmul.mubr.msk.bf16.gmra.mrb[112].mxu1 %vm859_vm3, %v857_v27  ;;  %v1449_v34 = vadd.f32 %v1447_v32, %v1438_v24 }
 0x324   : > { %v1057_v36 = vpop.f32.mrb[12].mxu0  ;;  %v3449_v37 = vpop.f32.mrb[8].mxu1 }
 0x325   : > { %v1455_v38 = vmul.f32 %v2295_v35, %v1057_v36  ;;  %v2445_v39 = vpop.f32.mrb[13].mxu0  ;;  %v2525_v40 = vpop.f32.mrb[9].mxu1 }
 0x326   : > { %v1060_v41 = vpop.f32.mrb[14].mxu0  ;;  %v3451_v42 = vpop.f32.mrb[10].mxu1 }
 0x327   : > { %v1457_v43 = vadd.f32 %v1455_v38, %v1448_v31  ;;  %v1456_v44 = vmul.f32 %v2295_v35, %v1060_v41  ;;  %v2526_v45 = vpop.f32.mrb[11].mxu1  ;;  %v2446_v46 = vpop.f32.mrb[15].mxu0 }
 0x328   : > { %v2300_v45 = vld [vmem:[%s3896_s6 + $0x7] ss:$0 sm:$0xff] }
 0x329   : > { %v1458_v49 = vadd.f32 %v1456_v44, %v1449_v34 }
 0x32c   : > { %v1065_v51 = vpop.f32.mrb[16].mxu0  ;;  %v3456_v52 = vpop.f32.mrb[12].mxu1 }
 0x32d   : > { %v1464_v53 = vmul.f32 %v2296_v50, %v1065_v51  ;;  %v2449_v54 = vpop.f32.mrb[17].mxu0  ;;  %v2529_v55 = vpop.f32.mrb[13].mxu1 }
 0x32e   : > { %v1068_v56 = vpop.f32.mrb[18].mxu0  ;;  %v3458_v57 = vpop.f32.mrb[14].mxu1 }
 0x32f   : > { %v1466_v58 = vadd.f32 %v1464_v53, %v1457_v43  ;;  %v1465_v59 = vmul.f32 %v2296_v50, %v1068_v56  ;;  %v2530_v60 = vpop.f32.mrb[15].mxu1  ;;  %v2450_v61 = vpop.f32.mrb[19].mxu0 }
 0x331   : > { %v1467_v62 = vadd.f32 %v1465_v59, %v1458_v49 }
 0x334   : > { %v1073_v0 = vpop.f32.mrb[20].mxu0  ;;  %v3463_v1 = vpop.f32.mrb[16].mxu1 }
 0x335   : > { %v1473_v2 = vmul.f32 %v2297_v63, %v1073_v0  ;;  %v2453_v4 = vpop.f32.mrb[21].mxu0  ;;  %v2533_v5 = vpop.f32.mrb[17].mxu1 }
 0x336   : > { %v1076_v6 = vpop.f32.mrb[22].mxu0  ;;  %v3465_v8 = vpop.f32.mrb[18].mxu1 }
 0x337   : > { %v1475_v9 = vadd.f32 %v1473_v2, %v1466_v58  ;;  %v1474_v10 = vmul.f32 %v2297_v63, %v1076_v6  ;;  %v2534_v11 = vpop.f32.mrb[19].mxu1  ;;  %v2454_v13 = vpop.f32.mrb[23].mxu0 }
 0x339   : > { %v1476_v14 = vadd.f32 %v1474_v10, %v1467_v62  ;;  %v2301_v62 = vld [vmem:[%s3896_s6 + $0x8] ss:$0 sm:$0xff] }
 0x33c   : > { %v1081_v16 = vpop.f32.mrb[24].mxu0  ;;  %v3470_v17 = vpop.f32.mrb[20].mxu1 }
 0x33d   : > { %v1482_v18 = vmul.f32 %v2298_v15, %v1081_v16  ;;  %v2457_v19 = vpop.f32.mrb[25].mxu0  ;;  %v2537_v20 = vpop.f32.mrb[21].mxu1  ;;  %v2302_v16 = vld [vmem:[%s3896_s6 + $0x9] ss:$0 sm:$0xff] }
 0x33e   : > { %v1084_v22 = vpop.f32.mrb[26].mxu0  ;;  %v3472_v23 = vpop.f32.mrb[22].mxu1 }
 0x33f   : > { %v1484_v24 = vadd.f32 %v1482_v18, %v1475_v9  ;;  %v1483_v25 = vmul.f32 %v2298_v15, %v1084_v22  ;;  %v2538_v26 = vpop.f32.mrb[23].mxu1  ;;  %v2458_v27 = vpop.f32.mrb[27].mxu0 }
 0x341   : > { %v1485_v29 = vadd.f32 %v1483_v25, %v1476_v14 }
 0x344   : > { %v1089_v31 = vpop.f32.mrb[28].mxu0  ;;  %v3477_v32 = vpop.f32.mrb[24].mxu1 }
 0x345   : > { %v1491_v33 = vmul.f32 %v2299_v30, %v1089_v31  ;;  %v2461_v34 = vpop.f32.mrb[29].mxu0  ;;  %v2541_v35 = vpop.f32.mrb[25].mxu1 }
 0x346   : > { %v1092_v36 = vpop.f32.mrb[30].mxu0  ;;  %v3479_v38 = vpop.f32.mrb[26].mxu1  ;;  %v2303_v34 = vld [vmem:[%s3896_s6 + $0xa] ss:$0 sm:$0xff] }
 0x347   : > { %v1493_v39 = vadd.f32 %v1491_v33, %v1484_v24  ;;  %v1492_v40 = vmul.f32 %v2299_v30, %v1092_v36  ;;  %v2542_v41 = vpop.f32.mrb[27].mxu1  ;;  %v2462_v43 = vpop.f32.mrb[31].mxu0 }
 0x349   : > { %v1494_v44 = vadd.f32 %v1492_v40, %v1485_v29 }
 0x34c   : > { %v1097_v46 = vpop.f32.mrb[32].mxu0  ;;  %v3484_v49 = vpop.f32.mrb[28].mxu1 }
 0x34d   : > { %v1500_v50 = vmul.f32 %v2300_v45, %v1097_v46  ;;  %v2465_v51 = vpop.f32.mrb[33].mxu0  ;;  %v2545_v53 = vpop.f32.mrb[29].mxu1 }
 0x34e   : > { %v1100_v54 = vpop.f32.mrb[34].mxu0  ;;  %v3486_v55 = vpop.f32.mrb[30].mxu1 }
 0x34f   : > { %v1502_v56 = vadd.f32 %v1500_v50, %v1493_v39  ;;  %v1501_v58 = vmul.f32 %v2300_v45, %v1100_v54  ;;  %v2546_v59 = vpop.f32.mrb[31].mxu1  ;;  %v2466_v60 = vpop.f32.mrb[35].mxu0  ;;  %v2304_v54 = vld [vmem:[%s3896_s6 + $0xb] ss:$0 sm:$0xff] }
 0x351   : > { %v1503_v61 = vadd.f32 %v1501_v58, %v1494_v44 }
 0x354   : > { %v1105_v63 = vpop.f32.mrb[36].mxu0  ;;  %v3491_v0 = vpop.f32.mrb[32].mxu1 }
 0x355   : > { %v1509_v2 = vmul.f32 %v2301_v62, %v1105_v63  ;;  %v2469_v4 = vpop.f32.mrb[37].mxu0  ;;  %v2549_v5 = vpop.f32.mrb[33].mxu1 }
 0x356   : > { %v1108_v6 = vpop.f32.mrb[38].mxu0  ;;  %v3493_v9 = vpop.f32.mrb[34].mxu1 }
 0x357   : > { %v1511_v10 = vadd.f32 %v1509_v2, %v1502_v56  ;;  %v1510_v11 = vmul.f32 %v2301_v62, %v1108_v6  ;;  %v2550_v13 = vpop.f32.mrb[35].mxu1  ;;  %v2470_v14 = vpop.f32.mrb[39].mxu0 }
 0x359   : > { %v1512_v15 = vadd.f32 %v1510_v11, %v1503_v61  ;;  %v2305_v11 = vld [vmem:[%s3896_s6 + $0xc] ss:$0 sm:$0xff] }
 0x35c   : > { %v1113_v18 = vpop.f32.mrb[40].mxu0  ;;  %v3498_v19 = vpop.f32.mrb[36].mxu1 }
 0x35d   : > { %v1518_v20 = vmul.f32 %v2302_v16, %v1113_v18  ;;  %v2473_v22 = vpop.f32.mrb[41].mxu0  ;;  %v2553_v24 = vpop.f32.mrb[37].mxu1 }
 0x35e   : > { %v1116_v25 = vpop.f32.mrb[42].mxu0  ;;  %v3500_v26 = vpop.f32.mrb[38].mxu1 }
 0x35f   : > { %v1520_v27 = vadd.f32 %v1518_v20, %v1511_v10  ;;  %v1519_v29 = vmul.f32 %v2302_v16, %v1116_v25  ;;  %v2554_v30 = vpop.f32.mrb[39].mxu1  ;;  %v2474_v31 = vpop.f32.mrb[43].mxu0 }
 0x360   : > { %v2306_v31 = vld [vmem:[%s3896_s6 + $0xd] ss:$0 sm:$0xff] }
 0x361   : > { %v1521_v33 = vadd.f32 %v1519_v29, %v1512_v15 }
 0x364   : > { %v1121_v35 = vpop.f32.mrb[44].mxu0  ;;  %v3505_v36 = vpop.f32.mrb[40].mxu1 }
 0x365   : > { %v1527_v39 = vmul.f32 %v2303_v34, %v1121_v35  ;;  %v2477_v40 = vpop.f32.mrb[45].mxu0  ;;  %v2557_v41 = vpop.f32.mrb[41].mxu1 }
 0x366   : > { %v1124_v43 = vpop.f32.mrb[46].mxu0  ;;  %v3507_v44 = vpop.f32.mrb[42].mxu1 }
 0x367   : > { %v1529_v45 = vadd.f32 %v1527_v39, %v1520_v27  ;;  %v1528_v46 = vmul.f32 %v2303_v34, %v1124_v43  ;;  %v2558_v50 = vpop.f32.mrb[43].mxu1  ;;  %v2478_v51 = vpop.f32.mrb[47].mxu0 }
 0x369   : > { %v1530_v53 = vadd.f32 %v1528_v46, %v1521_v33 }
 0x36c   : > { %v1129_v56 = vpop.f32.mrb[48].mxu0  ;;  %v3512_v58 = vpop.f32.mrb[44].mxu1 }
 0x36d   : > { %v1536_v59 = vmul.f32 %v2304_v54, %v1129_v56  ;;  %v2481_v60 = vpop.f32.mrb[49].mxu0  ;;  %v2561_v61 = vpop.f32.mrb[45].mxu1 }
 0x36e   : > { %v1132_v62 = vpop.f32.mrb[50].mxu0  ;;  %v3514_v63 = vpop.f32.mrb[46].mxu1 }
 0x36f   : > { %v1538_v2 = vadd.f32 %v1536_v59, %v1529_v45  ;;  %v1537_v4 = vmul.f32 %v2304_v54, %v1132_v62  ;;  %v2562_v5 = vpop.f32.mrb[47].mxu1  ;;  %v2482_v6 = vpop.f32.mrb[51].mxu0  ;;  %v2307_v54 = vld [vmem:[%s3896_s6 + $0xe] ss:$0 sm:$0xff] }
 0x371   : > { %v1539_v10 = vadd.f32 %v1537_v4, %v1530_v53 }
 0x374   : > { %v1137_v13 = vpop.f32.mrb[52].mxu0  ;;  %v3519_v14 = vpop.f32.mrb[48].mxu1 }
 0x375   : > { %v1545_v15 = vmul.f32 %v2305_v11, %v1137_v13  ;;  %v2485_v16 = vpop.f32.mrb[53].mxu0  ;;  %v2565_v18 = vpop.f32.mrb[49].mxu1 }
 0x376   : > { %v1140_v20 = vpop.f32.mrb[54].mxu0  ;;  %v3521_v22 = vpop.f32.mrb[50].mxu1 }
 0x377   : > { %v1547_v24 = vadd.f32 %v1545_v15, %v1538_v2  ;;  %v1546_v25 = vmul.f32 %v2305_v11, %v1140_v20  ;;  %v2566_v27 = vpop.f32.mrb[51].mxu1  ;;  %v2486_v29 = vpop.f32.mrb[55].mxu0  ;;  %v2308_v15 = vld [vmem:[%s3896_s6 + $0xf] ss:$0 sm:$0xff] }
 0x379   : > { %v1548_v30 = vadd.f32 %v1546_v25, %v1539_v10 }
 0x37c   : > { %v1145_v33 = vpop.f32.mrb[56].mxu0  ;;  %v3526_v34 = vpop.f32.mrb[52].mxu1 }
 0x37d   : > { %v1554_v35 = vmul.f32 %v2306_v31, %v1145_v33  ;;  %v2489_v39 = vpop.f32.mrb[57].mxu0  ;;  %v2569_v40 = vpop.f32.mrb[53].mxu1 }
 0x37e   : > { %v1148_v41 = vpop.f32.mrb[58].mxu0  ;;  %v3528_v43 = vpop.f32.mrb[54].mxu1  ;;  %v2309_v40 = vld [vmem:[%s3896_s6 + $0x10] ss:$0 sm:$0xff] }
 0x37f   : > { %v1556_v45 = vadd.f32 %v1554_v35, %v1547_v24  ;;  %v1555_v46 = vmul.f32 %v2306_v31, %v1148_v41  ;;  %v2570_v50 = vpop.f32.mrb[55].mxu1  ;;  %v2490_v51 = vpop.f32.mrb[59].mxu0 }
 0x381   : > { %v1557_v53 = vadd.f32 %v1555_v46, %v1548_v30 }
 0x384   : > { %v1153_v56 = vpop.f32.mrb[60].mxu0  ;;  %v3533_v59 = vpop.f32.mrb[56].mxu1 }
 0x385   : > { %v1563_v60 = vmul.f32 %v2307_v54, %v1153_v56  ;;  %v2493_v61 = vpop.f32.mrb[61].mxu0  ;;  %v2573_v62 = vpop.f32.mrb[57].mxu1 }
 0x386   : > { %v1156_v2 = vpop.f32.mrb[62].mxu0  ;;  %v3535_v4 = vpop.f32.mrb[58].mxu1 }
 0x387   : > { %v1565_v5 = vadd.f32 %v1563_v60, %v1556_v45  ;;  %v1564_v6 = vmul.f32 %v2307_v54, %v1156_v2  ;;  %v2574_v10 = vpop.f32.mrb[59].mxu1  ;;  %v2494_v11 = vpop.f32.mrb[63].mxu0 }
 0x389   : > { %v1566_v13 = vadd.f32 %v1564_v6, %v1557_v53 }
 0x38c   : > { %v1161_v16 = vpop.f32.mrb[64].mxu0  ;;  %v3540_v18 = vpop.f32.mrb[60].mxu1 }
 0x38d   : > { %v1572_v20 = vmul.f32 %v2308_v15, %v1161_v16  ;;  %v2497_v24 = vpop.f32.mrb[65].mxu0  ;;  %v2577_v25 = vpop.f32.mrb[61].mxu1 }
 0x38e   : > { %v1164_v27 = vpop.f32.mrb[66].mxu0  ;;  %v3542_v29 = vpop.f32.mrb[62].mxu1 }
 0x38f   : > { %v1574_v30 = vadd.f32 %v1572_v20, %v1565_v5  ;;  %v1573_v31 = vmul.f32 %v2308_v15, %v1164_v27  ;;  %v2578_v33 = vpop.f32.mrb[63].mxu1  ;;  %v2498_v35 = vpop.f32.mrb[67].mxu0  ;;  %v2310_v5 = vld [vmem:[%s3896_s6 + $0x11] ss:$0 sm:$0xff] }
 0x390   : > { %v2311_v33 = vld [vmem:[%s3896_s6 + $0x12] ss:$0 sm:$0xff] }
 0x391   : > { %v1575_v39 = vadd.f32 %v1573_v31, %v1566_v13 }
 0x394   : > { %v1169_v41 = vpop.f32.mrb[68].mxu0  ;;  %v3547_v45 = vpop.f32.mrb[64].mxu1 }
 0x395   : > { %v1581_v46 = vmul.f32 %v2309_v40, %v1169_v41  ;;  %v2501_v50 = vpop.f32.mrb[69].mxu0  ;;  %v2581_v51 = vpop.f32.mrb[65].mxu1 }
 0x396   : > { %v1172_v53 = vpop.f32.mrb[70].mxu0  ;;  %v3549_v54 = vpop.f32.mrb[66].mxu1 }
 0x397   : > { %v1583_v56 = vadd.f32 %v1581_v46, %v1574_v30  ;;  %v1582_v60 = vmul.f32 %v2309_v40, %v1172_v53  ;;  %v2582_v61 = vpop.f32.mrb[67].mxu1  ;;  %v2502_v62 = vpop.f32.mrb[71].mxu0 }
 0x399   : > { %v1584_v2 = vadd.f32 %v1582_v60, %v1575_v39 }
 0x39c   : > { %v1177_v6 = vpop.f32.mrb[72].mxu0  ;;  %v3554_v10 = vpop.f32.mrb[68].mxu1 }
 0x39d   : > { %v1590_v11 = vmul.f32 %v2310_v5, %v1177_v6  ;;  %v2505_v13 = vpop.f32.mrb[73].mxu0  ;;  %v2585_v15 = vpop.f32.mrb[69].mxu1 }
 0x39e   : > { %v1180_v16 = vpop.f32.mrb[74].mxu0  ;;  %v3556_v20 = vpop.f32.mrb[70].mxu1 }
 0x39f   : > { %v1592_v24 = vadd.f32 %v1590_v11, %v1583_v56  ;;  %v1591_v25 = vmul.f32 %v2310_v5, %v1180_v16  ;;  %v2586_v27 = vpop.f32.mrb[71].mxu1  ;;  %v2506_v30 = vpop.f32.mrb[75].mxu0  ;;  %v2313_v5 = vld [vmem:[%s3896_s6 + $0x14] ss:$0 sm:$0xff] }
 0x3a0   : > { %v1617_v30 = vmul.f32 %v2313_v5, %v3422_v7 }
 0x3a1   : > { %v1593_v31 = vadd.f32 %v1591_v25, %v1584_v2  ;;  %v2312_v2 = vld [vmem:[%s3896_s6 + $0x13] ss:$0 sm:$0xff] }
 0x3a4   : > { %v1185_v35 = vpop.f32.mrb[76].mxu0  ;;  %v3561_v39 = vpop.f32.mrb[72].mxu1 }
 0x3a5   : > { %v1599_v40 = vmul.f32 %v2311_v33, %v1185_v35  ;;  %v2509_v41 = vpop.f32.mrb[77].mxu0  ;;  %v2589_v46 = vpop.f32.mrb[73].mxu1 }
 0x3a6   : > { %v1188_v50 = vpop.f32.mrb[78].mxu0  ;;  %v3563_v51 = vpop.f32.mrb[74].mxu1  ;;  %v2315_v41 = vld [vmem:[%s3896_s6 + $0x16] ss:$0 sm:$0xff]  ;;  %v1618_v46 = vmul.f32 %v2313_v5, %v3424_v12 }
 0x3a7   : > { %v1601_v53 = vadd.f32 %v1599_v40, %v1592_v24  ;;  %v1600_v60 = vmul.f32 %v2311_v33, %v1188_v50  ;;  %v2590_v56 = vpop.f32.mrb[75].mxu1  ;;  %v2510_v61 = vpop.f32.mrb[79].mxu0  ;;  %v2314_v24 = vld [vmem:[%s3896_s6 + $0x15] ss:$0 sm:$0xff]  ;;  %v1636_v12 = vmul.f32 %v2315_v41, %v3451_v42  ;;  %v2319_v42 = vld [vmem:[%s3896_s6 + $0x1a] ss:$0 sm:$0xff] }
 0x3a8   : > { %v1626_v50 = vmul.f32 %v2314_v24, %v3441_v21  ;;  %v2316_v61 = vld [vmem:[%s3896_s6 + $0x17] ss:$0 sm:$0xff]  ;;  %v1627_v7 = vmul.f32 %v2314_v24, %v3443_v28  ;;  %v2318_v28 = vld [vmem:[%s3896_s6 + $0x19] ss:$0 sm:$0xff] }
 0x3a9   : > { %v1602_v62 = vadd.f32 %v1600_v60, %v1593_v31  ;;  %v1644_v21 = vmul.f32 %v2316_v61, %v3456_v52  ;;  %v1645_v24 = vmul.f32 %v2316_v61, %v3458_v57  ;;  %v1663_v57 = vmul.f32 %v2318_v28, %v3472_v23  ;;  %v2322_v23 = vld [vmem:[%s3896_s6 + $0x1d] ss:$0 sm:$0xff] }
 0x3ac   : > { %v1193_v6 = vpop.f32.mrb[80].mxu0  ;;  %v3571_v11 = vpop.f32.mrb[76].mxu1 }
 0x3ad   : > { %v1608_v13 = vmul.f32 %v2312_v2, %v1193_v6  ;;  %v2513_v15 = vpop.f32.mrb[81].mxu0  ;;  %v2593_v16 = vpop.f32.mrb[77].mxu1 }
 0x3ae   : > { %v1196_v25 = vpop.f32.mrb[82].mxu0  ;;  %v3576_v27 = vpop.f32.mrb[78].mxu1 }
 0x3af   : > { %v1610_v31 = vadd.f32 %v1608_v13, %v1601_v53  ;;  %v1609_v33 = vmul.f32 %v2312_v2, %v1196_v25  ;;  %v2594_v35 = vpop.f32.mrb[79].mxu1  ;;  %v2514_v40 = vpop.f32.mrb[83].mxu0  ;;  %v1635_v53 = vmul.f32 %v2315_v41, %v3449_v37  ;;  %v2317_v13 = vld [vmem:[%s3896_s6 + $0x18] ss:$0 sm:$0xff] }
 0x3b0   : > { %v1653_v25 = vmul.f32 %v2317_v13, %v3463_v1  ;;  %v1654_v52 = vmul.f32 %v2317_v13, %v3465_v8  ;;  %v1662_v35 = vmul.f32 %v2318_v28, %v3470_v17  ;;  %v1671_v1 = vmul.f32 %v2319_v42, %v3477_v32 }
 0x3b1   : > { %v1619_v60 = vadd.f32 %v1617_v30, %v1610_v31  ;;  %v1611_v56 = vadd.f32 %v1609_v33, %v1602_v62  ;;  %v1672_v8 = vmul.f32 %v2319_v42, %v3479_v38  ;;  %v2323_v38 = vld [vmem:[%s3896_s6 + $0x1e] ss:$0 sm:$0xff] }
 0x3b3   : > { %v1628_v2 = vadd.f32 %v1626_v50, %v1619_v60  ;;  %v1620_v6 = vadd.f32 %v1618_v46, %v1611_v56  ;;  %v2320_v46 = vld [vmem:[%s3896_s6 + $0x1b] ss:$0 sm:$0xff]  ;;  %v2321_v56 = vld [vmem:[%s3896_s6 + $0x1c] ss:$0 sm:$0xff] }
 0x3b4   : > { %v3592_v15 = vpop.f32.mrb[80].mxu1  ;;  %v1680_v17 = vmul.f32 %v2320_v46, %v3484_v49  ;;  %v1689_v13 = vmul.f32 %v2321_v56, %v3491_v0  ;;  %v1690_v49 = vmul.f32 %v2321_v56, %v3493_v9  ;;  %v1707_v0 = vmul.f32 %v2323_v38, %v3505_v36 }
 0x3b5   : > { %v1637_v62 = vadd.f32 %v1635_v53, %v1628_v2  ;;  %v1629_v5 = vadd.f32 %v1627_v7, %v1620_v6  ;;  %v2597_v16 = vpop.f32.mrb[81].mxu1  ;;  %v1681_v6 = vmul.f32 %v2320_v46, %v3486_v55  ;;  %v1699_v55 = vmul.f32 %v2322_v23, %v3500_v26  ;;  %v2326_v26 = vld [vmem:[%s3896_s6 + $0x21] ss:$0 sm:$0xff] }
 0x3b6   : > { %v3599_v37 = vpop.f32.mrb[82].mxu1  ;;  %v1708_v9 = vmul.f32 %v2323_v38, %v3507_v44  ;;  %v2327_v44 = vld [vmem:[%s3896_s6 + $0x22] ss:$0 sm:$0xff] }
 0x3b7   : > { %v1646_v30 = vadd.f32 %v1644_v21, %v1637_v62  ;;  %v1638_v31 = vadd.f32 %v1636_v12, %v1629_v5  ;;  %v2598_v33 = vpop.f32.mrb[83].mxu1  ;;  %v1698_v5 = vmul.f32 %v2322_v23, %v3498_v19 }
 0x3b9   : > { %v1655_v40 = vadd.f32 %v1653_v25, %v1646_v30  ;;  %v1647_v41 = vadd.f32 %v1645_v24, %v1638_v31  ;;  %v2324_v24 = vld [vmem:[%s3896_s6 + $0x1f] ss:$0 sm:$0xff]  ;;  %v2325_v31 = vld [vmem:[%s3896_s6 + $0x20] ss:$0 sm:$0xff] }
 0x3ba   : > { %v1716_v19 = vmul.f32 %v2324_v24, %v3512_v58  ;;  %v1726_v58 = vmul.f32 %v2325_v31, %v3521_v22  ;;  %v1744_v22 = vmul.f32 %v2327_v44, %v3535_v4  ;;  %v2331_v4 = vld [vmem:[%s3896_s6 + $0x26] ss:$0 sm:$0xff] }
 0x3bb   : > { %v1664_v50 = vadd.f32 %v1662_v35, %v1655_v40  ;;  %v1656_v60 = vadd.f32 %v1654_v52, %v1647_v41  ;;  %v1717_v40 = vmul.f32 %v2324_v24, %v3514_v63  ;;  %v1725_v41 = vmul.f32 %v2325_v31, %v3519_v14  ;;  %v2332_v24 = vld [vmem:[%s3896_s6 + $0x27] ss:$0 sm:$0xff] }
 0x3bc   : > { %v3616_v61 = vpop.f32.mrb[84].mxu1  ;;  %v1735_v63 = vmul.f32 %v2326_v26, %v3528_v43  ;;  %v1743_v14 = vmul.f32 %v2327_v44, %v3533_v59  ;;  %v2330_v43 = vld [vmem:[%s3896_s6 + $0x25] ss:$0 sm:$0xff]  ;;  %v1788_v31 = vmul.f32 %v2332_v24, %v3571_v11 }
 0x3bd   : > { %v1673_v7 = vadd.f32 %v1671_v1, %v1664_v50  ;;  %v1665_v53 = vadd.f32 %v1663_v57, %v1656_v60  ;;  %v2601_v2 = vpop.f32.mrb[85].mxu1  ;;  %v1734_v50 = vmul.f32 %v2326_v26, %v3526_v34 }
 0x3be   : > { %v3623_v32 = vpop.f32.mrb[86].mxu1 }
 0x3bf   : > { %v1682_v12 = vadd.f32 %v1680_v17, %v1673_v7  ;;  %v1674_v21 = vadd.f32 %v1672_v8, %v1665_v53  ;;  %v2602_v62 = vpop.f32.mrb[87].mxu1  ;;  %v2328_v8 = vld [vmem:[%s3896_s6 + $0x23] ss:$0 sm:$0xff]  ;;  %v2329_v53 = vld [vmem:[%s3896_s6 + $0x24] ss:$0 sm:$0xff] }
 0x3c0   : > { %v1752_v34 = vmul.f32 %v2328_v8, %v3540_v18  ;;  %v1753_v59 = vmul.f32 %v2328_v8, %v3542_v29  ;;  %v1762_v18 = vmul.f32 %v2329_v53, %v3549_v54  ;;  %v1771_v29 = vmul.f32 %v2330_v43, %v3556_v20  ;;  %v2334_v20 = vld [vmem:[%s3896_s6 + $0x29] ss:$0 sm:$0xff] }
 0x3c1   : > { %v1691_v16 = vadd.f32 %v1689_v13, %v1682_v12  ;;  %v1683_v28 = vadd.f32 %v1681_v6, %v1674_v21  ;;  %v1761_v21 = vmul.f32 %v2329_v53, %v3547_v45  ;;  %v1779_v45 = vmul.f32 %v2331_v4, %v3561_v39 }
 0x3c2   : > { %v1780_v54 = vmul.f32 %v2331_v4, %v3563_v51  ;;  %v2335_v51 = vld [vmem:[%s3896_s6 + $0x2a] ss:$0 sm:$0xff] }
 0x3c3   : > { %v1700_v25 = vadd.f32 %v1698_v5, %v1691_v16  ;;  %v1692_v30 = vadd.f32 %v1690_v49, %v1683_v28  ;;  %v1770_v5 = vmul.f32 %v2330_v43, %v3554_v10 }
 0x3c4   : > { %v3640_v33 = vpop.f32.mrb[88].mxu1 }
 0x3c5   : > { %v1709_v42 = vadd.f32 %v1707_v0, %v1700_v25  ;;  %v1701_v52 = vadd.f32 %v1699_v55, %v1692_v30  ;;  %v2605_v35 = vpop.f32.mrb[89].mxu1  ;;  %v2333_v25 = vld [vmem:[%s3896_s6 + $0x28] ss:$0 sm:$0xff] }
 0x3c6   : > { %v3647_v36 = vpop.f32.mrb[90].mxu1  ;;  %v1789_v35 = vmul.f32 %v2332_v24, %v3576_v27  ;;  %v1797_v26 = vmul.f32 %v2333_v25, %v3592_v15  ;;  %v1807_v27 = vmul.f32 %v2334_v20, %v3623_v32  ;;  %v1815_v15 = vmul.f32 %v2335_v51, %v3640_v33 }
 0x3c7   : > { %v1718_v46 = vadd.f32 %v1716_v19, %v1709_v42  ;;  %v1710_v57 = vadd.f32 %v1708_v9, %v1701_v52  ;;  %v2606_v1 = vpop.f32.mrb[91].mxu1 }
 0x3c8   : > { %v2336_v1 = vld [vmem:[%s3896_s6 + $0x2b] ss:$0 sm:$0xff] }
 0x3c9   : > { %v1727_v60 = vadd.f32 %v1725_v41, %v1718_v46  ;;  %v1719_v56 = vadd.f32 %v1717_v40, %v1710_v57  ;;  %v1798_v46 = vmul.f32 %v2333_v25, %v3599_v37  ;;  %v1806_v57 = vmul.f32 %v2334_v20, %v3616_v61 }
 0x3ca   : > { %v1816_v37 = vmul.f32 %v2335_v51, %v3647_v36  ;;  %v2339_v36 = vld [vmem:[%s3896_s6 + $0x2e] ss:$0 sm:$0xff] }
 0x3cb   : > { %v1736_v17 = vadd.f32 %v1734_v50, %v1727_v60  ;;  %v1728_v7 = vadd.f32 %v1726_v58, %v1719_v56  ;;  %v2337_v50 = vld [vmem:[%s3896_s6 + $0x2c] ss:$0 sm:$0xff] }
 0x3cc   : > { %v1385_v2 = vpop.f32.mrb[92].mxu1 }
 0x3cd   : > { %v1745_v23 = vadd.f32 %v1743_v14, %v1736_v17  ;;  %v1737_v6 = vadd.f32 %v1735_v63, %v1728_v7  ;;  %v2609_v13 = vpop.f32.mrb[93].mxu1  ;;  %v1824_v61 = vmul.f32 %v2336_v1, %v1385_v2  ;;  %v2338_v14 = vld [vmem:[%s3896_s6 + $0x2d] ss:$0 sm:$0xff] }
 0x3ce   : > { %v1388_v12 = vpop.f32.mrb[94].mxu1 }
 0x3cf   : > { %v1754_v62 = vadd.f32 %v1752_v34, %v1745_v23  ;;  %v1746_v38 = vadd.f32 %v1744_v22, %v1737_v6  ;;  %v2610_v49 = vpop.f32.mrb[95].mxu1  ;;  %v1825_v53 = vmul.f32 %v2336_v1, %v1388_v12  ;;  %v1928_v1 = vld [vmem:[%s3900_s10 + $0x10] sm:$0xff] }
 0x3d1   : > { %v1763_v16 = vadd.f32 %v1761_v21, %v1754_v62  ;;  %v1755_v28 = vadd.f32 %v1753_v59, %v1746_v38 }
 0x3d3   : > { %v1772_v55 = vadd.f32 %v1770_v5, %v1763_v16  ;;  %v1764_v0 = vadd.f32 %v1762_v18, %v1755_v28  ;;  %v2340_v28 = vld [vmem:[%s3896_s6 + $0x2f] ss:$0 sm:$0xff] }
 0x3d4   : > { %v1393_v30 = vpop.f32.mrb[96].mxu1 }
 0x3d5   : > { %v1781_v10 = vadd.f32 %v1779_v45, %v1772_v55  ;;  %v1773_v9 = vadd.f32 %v1771_v29, %v1764_v0  ;;  %v2613_v19 = vpop.f32.mrb[97].mxu1  ;;  %v1833_v33 = vmul.f32 %v2337_v50, %v1393_v30 }
 0x3d6   : > { %v1396_v42 = vpop.f32.mrb[98].mxu1 }
 0x3d7   : > { %v1790_v39 = vadd.f32 %v1788_v31, %v1781_v10  ;;  %v1782_v52 = vadd.f32 %v1780_v54, %v1773_v9  ;;  %v2614_v40 = vpop.f32.mrb[99].mxu1  ;;  %v1834_v6 = vmul.f32 %v2337_v50, %v1396_v42  ;;  %v2341_v10 = vld [vmem:[%s3896_s6 + $0x30] ss:$0 sm:$0xff]  ;;  %v2342_v42 = vld [vmem:[%s3897_s7] ss:$0 sm:$0xff] }
 0x3d9   : > { %v1791_v41 = vadd.f32 %v1789_v35, %v1782_v52  ;;  %v1799_v11 = vadd.f32 %v1797_v26, %v1790_v39 }
 0x3db   : > { %v1800_v44 = vadd.f32 %v1798_v46, %v1791_v41  ;;  %v1808_v58 = vadd.f32 %v1806_v57, %v1799_v11  ;;  %v1926_v46 = vld [vmem:[%s3900_s10] sm:$0xff]  ;;  %v1927_v57 = vld [vmem:[%s3900_s10 + $0x8] sm:$0xff] }
 0x3dc   : > { %v1401_v60 = vpop.f32.mrb[100].mxu1 }
 0x3dd   : > { %v1809_v56 = vadd.f32 %v1807_v27, %v1800_v44  ;;  %v1817_v8 = vadd.f32 %v1815_v15, %v1808_v58  ;;  %v2617_v63 = vpop.f32.mrb[101].mxu1  ;;  %v1842_v13 = vmul.f32 %v2338_v14, %v1401_v60  ;;  %v1931_v44 = vpack.c.bf16 %v1927_v57, %v1926_v46  ;;  %v1929_v58 = vld [vmem:[%s3900_s10 + $0x18] sm:$0xff] }
 0x3de   : > { %v1404_v17 = vpop.f32.mrb[102].mxu1  ;;  %v1932_v27 = vpack.c.bf16 %v1929_v58, %v1928_v1 }
 0x3df   : > { %v1818_v7 = vadd.f32 %v1816_v37, %v1809_v56  ;;  %v1826_v32 = vadd.f32 %v1824_v61, %v1817_v8  ;;  %v2618_v22 = vpop.f32.mrb[103].mxu1  ;;  %v1843_v59 = vmul.f32 %v2338_v14, %v1404_v17  ;;  %2632 = vmatpush3.bf16.msra.mxu0 %v1931_v44 }
 0x3e0   : > { %2633 = vmatprep.subr.bf16.mxu0 %v2788_v3 }
 0x3e1   : > { %v1827_v34 = vadd.f32 %v1825_v53, %v1818_v7  ;;  %v1835_v23 = vadd.f32 %v1833_v33, %v1826_v32 }
 0x3e3   : > { %v1836_v2 = vadd.f32 %v1834_v6, %v1827_v34  ;;  %v1844_v43 = vadd.f32 %v1842_v13, %v1835_v23  ;;  %2634 = vmatpush3.bf16.msra.mxu0 %v1932_v27  ;;  %v2343_v6 = vld [vmem:[%s3898_s8] ss:$0 sm:$0xff] }
 0x3e4   : > { %v1409_v21 = vpop.f32.mrb[104].mxu1  ;;  %2639 = vmatprep.subr.bf16.mxu0 %v2788_v3 }
 0x3e5   : > { %v1845_v62 = vadd.f32 %v1843_v59, %v1836_v2  ;;  %v1851_v38 = vmul.f32 %v2339_v36, %v1409_v21  ;;  %v2621_v49 = vpop.f32.mrb[105].mxu1  ;;  %v2344_v59 = vld [vmem:[%s3899_s9] ss:$0 sm:$0xff] }
 0x3e6   : > { %v1412_v4 = vpop.f32.mrb[106].mxu1 }
 0x3e7   : > { %v1853_v18 = vadd.f32 %v1851_v38, %v1844_v43  ;;  %v1852_v12 = vmul.f32 %v2339_v36, %v1412_v4  ;;  %v2622_v5 = vpop.f32.mrb[107].mxu1  ;;  %v2002_v4 = vld [vmem:[%s3902_s12] sm:$0xff] }
 0x3e8   : > { %v2004_v5 = vld [vmem:[%s3902_s12 + $0x10] sm:$0xff] }
 0x3e9   : > { %v1854_v16 = vadd.f32 %v1852_v12, %v1845_v62 }
 0x3ec   : > { %v1417_v24 = vpop.f32.mrb[108].mxu1 }
 0x3ed   : > { %v1860_v29 = vmul.f32 %v2340_v28, %v1417_v24  ;;  %v2625_v45 = vpop.f32.mrb[109].mxu1  ;;  %v2006_v24 = vld [vmem:[%s3902_s12 + $0x20] sm:$0xff] }
 0x3ee   : > { %v1420_v55 = vpop.f32.mrb[110].mxu1 }
 0x3ef   : > { %v1862_v0 = vadd.f32 %v1860_v29, %v1853_v18  ;;  %v1861_v25 = vmul.f32 %v2340_v28, %v1420_v55  ;;  %v2626_v30 = vpop.f32.mrb[111].mxu1  ;;  %v2003_v18 = vld [vmem:[%s3902_s12 + $0x8] sm:$0xff]  ;;  %v2008_v55 = vld [vmem:[%s3902_s12 + $0x30] sm:$0xff] }
 0x3f0   : > { %v2019_v12 = vpack.c.bf16 %v2003_v18, %v2002_v4  ;;  %v2007_v29 = vld [vmem:[%s3902_s12 + $0x28] sm:$0xff]  ;;  %v2010_v30 = vld [vmem:[%s3902_s12 + $0x40] sm:$0xff] }
 0x3f1   : > { %v1863_v54 = vadd.f32 %v1861_v25, %v1854_v16  ;;  %v2005_v16 = vld [vmem:[%s3902_s12 + $0x18] sm:$0xff]  ;;  %v2021_v45 = vpack.c.bf16 %v2007_v29, %v2006_v24 }
 0x3f2   : > { %v2020_v28 = vpack.c.bf16 %v2005_v16, %v2004_v5 }
 0x3f4   : > { %v1425_v31 = vpop.f32.mrb[112].mxu1 }
 0x3f5   : > { %v1869_v9 = vmul.f32 %v2341_v10, %v1425_v31  ;;  %v2629_v19 = vpop.f32.mrb[113].mxu1  ;;  %v2012_v31 = vld [vmem:[%s3902_s12 + $0x50] sm:$0xff] }
 0x3f6   : > { %v1428_v20 = vpop.f32.mrb[114].mxu1 }
 0x3f7   : > { %v1871_v39 = vadd.f32 %v1869_v9, %v1862_v0  ;;  %v1870_v52 = vmul.f32 %v2341_v10, %v1428_v20  ;;  %v2630_v35 = vpop.f32.mrb[115].mxu1  ;;  %v2009_v0 = vld [vmem:[%s3902_s12 + $0x38] sm:$0xff]  ;;  %v2014_v20 = vld [vmem:[%s3902_s12 + $0x60] sm:$0xff] }
 0x3f8   : > { %v2022_v25 = vpack.c.bf16 %v2009_v0, %v2008_v55  ;;  %v2013_v9 = vld [vmem:[%s3902_s12 + $0x58] sm:$0xff] }
 0x3f9   : > { %v1872_v26 = vadd.f32 %v1870_v52, %v1863_v54  ;;  %v1880_v40 = vadd.f32 %v2342_v42, %v1871_v39  ;;  %v2011_v54 = vld [vmem:[%s3902_s12 + $0x48] sm:$0xff]  ;;  %v2024_v19 = vpack.c.bf16 %v2013_v9, %v2012_v31  ;;  %v2016_v52 = vld [vmem:[%s3902_s12 + $0x70] sm:$0xff]  ;;  %v2017_v35 = vld [vmem:[%s3902_s12 + $0x78] sm:$0xff] }
 0x3fa   : > { %v2023_v10 = vpack.c.bf16 %v2011_v54, %v2010_v30  ;;  %v2114_v31 = vld [vmem:[%s3907_s17] sm:$0xff]  ;;  %v2115_v9 = vld [vmem:[%s3907_s17 + $0x8] sm:$0xff] }
 0x3fb   : > { %v1884_v51 = vsel %vm667_vm2, %v1880_v40, 0.0  ;;  %v1881_v41 = vadd.f32 %v2342_v42, %v1872_v26  ;;  %v2015_v42 = vld [vmem:[%s3902_s12 + $0x68] sm:$0xff]  ;;  %v2026_v26 = vpack.c.bf16 %v2017_v35, %v2016_v52 }
 0x3fc   : > { %1885 = vadd.xlane.f32.xlu0 %v1884_v51  ;;  %v2025_v39 = vpack.c.bf16 %v2015_v42, %v2014_v20  ;;  %v2116_v20 = vld [vmem:[%s3907_s17 + $0x10] sm:$0xff]  ;;  %v2117_v42 = vld [vmem:[%s3907_s17 + $0x18] sm:$0xff] }
 0x3fd   : > { %v1887_v11 = vsel %vm667_vm2, %v1881_v41, 0.0 }
 0x3fe   : > { %1888 = vadd.xlane.f32.xlu1 %v1887_v11 }
 0x489   : > { %v1886_v15 = vpop.xlane.xlu0 %1885 }
 0x48a   : > { %v1890_v50 = vmul.f32 0.03125, %v1886_v15 }
 0x48b   : > { %v1889_v60 = vpop.xlane.xlu1 %1888 }
 0x48c   : > { %v1892_v56 = vsub.f32 %v1880_v40, %v1890_v50  ;;  %v1891_v8 = vmul.f32 0.03125, %v1889_v60  ;;  %v2345_v40 = vld [vmem:[%s3901_s11] ss:$0 sm:$0xff] }
 0x48e   : > { %v1893_v37 = vsub.f32 %v1881_v41, %v1891_v8  ;;  %v1894_v61 = vmul.f32 %v1892_v56, %v1892_v56 }
 0x490   : > { %v1896_v63 = vsel %vm667_vm2, %v1894_v61, 0.0  ;;  %v1895_v14 = vmul.f32 %v1893_v37, %v1893_v37 }
 0x491   : > { %1897 = vadd.xlane.f32.xlu0 %v1896_v63 }
 0x492   : > { %v1899_v17 = vsel %vm667_vm2, %v1895_v14, 0.0 }
 0x493   : > { %1900 = vadd.xlane.f32.xlu1 %v1899_v17 }
 0x51e   : > { %v1898_v7 = vpop.xlane.xlu0 %1897 }
 0x51f   : > { %v1902_v32 = vmul.f32 0.03125, %v1898_v7 }
 0x520   : > { %v1901_v53 = vpop.xlane.xlu1 %1900 }
 0x521   : > { %v1904_v33 = vadd.f32 1e-06, %v1902_v32  ;;  %v1903_v22 = vmul.f32 0.03125, %v1901_v53 }
 0x523   : > { %2714 = vrsqrt.f32 %v1904_v33  ;;  %v1905_v34 = vadd.f32 1e-06, %v1903_v22 }
 0x525   : > { %2716 = vrsqrt.f32 %v1905_v34 }
 0x52d   : > { %v2715_v23 = vpop.eup %2714 }
 0x52e   : > { %v1908_v13 = vmul.f32 %v2715_v23, %v1892_v56  ;;  %v2347_v23 = vld [vmem:[%s3903_s13] ss:$0 sm:$0xff] }
 0x52f   : > { %v2717_v36 = vpop.eup %2716 }
 0x530   : > { %v1916_v2 = vmul.f32 %v2343_v6, %v1908_v13  ;;  %v1909_v43 = vmul.f32 %v2717_v36, %v1893_v37  ;;  %v2348_v13 = vld [vmem:[%s3904_s14] ss:$0 sm:$0xff] }
 0x532   : > { %v1917_v21 = vmul.f32 %v2343_v6, %v1909_v43  ;;  %v1924_v62 = vadd.f32 %v2344_v59, %v1916_v2 }
 0x534   : > { %v1925_v38 = vadd.f32 %v2344_v59, %v1917_v21 }
 0x536   : > { %v1930_v49 = vpack.c.bf16 %v1925_v38, %v1924_v62 }
 0x538   : > { %2636 = vmatmul.mubr.msk.bf16.vlgmr.msra.gmra.mrb[84].mxu0 %vm667_vm2, %v1930_v49 }
 0x539   : > { %2655 = vmatprep.mubr.msk.bf16.mxu0 %vm2789_vm0, %v2788_v3  ;;  %2640 = vmatpush3.bf16.msra.mxu0 %v2019_v12 }
 0x53a   : > { %2641 = vmatprep.subr.bf16.mxu0 %v2788_v3 }
 0x53d   : > { %2642 = vmatpush3.bf16.msra.mxu0 %v2020_v28 }
 0x53e   : > { %2643 = vmatprep.subr.bf16.mxu0 %v2788_v3 }
 0x541   : > { %2644 = vmatpush3.bf16.msra.mxu0 %v2021_v45 }
 0x542   : > { %2645 = vmatprep.subr.bf16.mxu0 %v2788_v3 }
 0x545   : > { %2646 = vmatpush3.bf16.msra.mxu0 %v2022_v25 }
 0x546   : > { %2647 = vmatprep.subr.bf16.mxu0 %v2788_v3 }
 0x549   : > { %2648 = vmatpush3.bf16.msra.mxu0 %v2023_v10 }
 0x54a   : > { %2649 = vmatprep.subr.bf16.mxu0 %v2788_v3 }
 0x54d   : > { %2650 = vmatpush3.bf16.msra.mxu0 %v2024_v19  ;;  %v2119_v19 = vpack.c.bf16 %v2115_v9, %v2114_v31 }
 0x54e   : > { %2651 = vmatprep.subr.bf16.mxu0 %v2788_v3 }
 0x551   : > { %2652 = vmatpush3.bf16.msra.mxu0 %v2025_v39  ;;  %v2120_v39 = vpack.c.bf16 %v2117_v42, %v2116_v20 }
 0x552   : > { %2653 = vmatprep.subr.bf16.mxu0 %v2788_v3 }
 0x555   : > { %2654 = vmatpush3.bf16.msra.mxu0 %v2026_v26 }
 0x556   : > { %2659 = vmatprep.subr.bf16.mxu0 %v2788_v3 }
 0x60b   : > { %v1977_v51 = vpop.f32.mrb[84].mxu0 }
 0x60c   : > { %v1978_v41 = vadd.f32 %v2345_v40, %v1977_v51  ;;  %v2637_v11 = vpop.f32.mrb[85].mxu0 }
 0x60d   : > { %v1980_v46 = vpop.f32.mrb[86].mxu0 }
 0x60e   : > { %v1986_v57 = vmul.f32 0.044715, %v1978_v41  ;;  %v1981_v1 = vadd.f32 %v2345_v40, %v1980_v46  ;;  %v2638_v44 = vpop.f32.mrb[87].mxu0  ;;  %v1984_v7 = vmul.f32 0.5, %v1978_v41 }
 0x610   : > { %v1988_v58 = vmul.f32 %v1986_v57, %v1978_v41  ;;  %v1987_v27 = vmul.f32 0.044715, %v1981_v1  ;;  %v1985_v32 = vmul.f32 0.5, %v1981_v1 }
 0x612   : > { %v1990_v15 = vmul.f32 %v1988_v58, %v1978_v41  ;;  %v1989_v50 = vmul.f32 %v1987_v27, %v1981_v1 }
 0x614   : > { %v1992_v60 = vadd.f32 %v1990_v15, %v1978_v41  ;;  %v1991_v56 = vmul.f32 %v1989_v50, %v1981_v1  ;;  %v2098_v41 = vld [vmem:[%s3906_s16] sm:$0x1] }
 0x616   : > { %v1994_v8 = vmul.f32 0.7978846, %v1992_v60  ;;  %v1993_v37 = vadd.f32 %v1991_v56, %v1981_v1  ;;  %v2121_v1 = vld [vmem:[%s3908_s18] sm:$0x1] }
 0x618   : > { %2718 = vtanh.f32 %v1994_v8  ;;  %v1995_v61 = vmul.f32 0.7978846, %v1993_v37 }
 0x61a   : > { %2720 = vtanh.f32 %v1995_v61 }
 0x622   : > { %v2719_v63 = vpop.eup %2718 }
 0x623   : > { %v1998_v14 = vadd.f32 1.0, %v2719_v63 }
 0x624   : > { %v2721_v17 = vpop.eup %2720 }
 0x625   : > { %v1999_v53 = vadd.f32 1.0, %v2721_v17  ;;  %v2000_v33 = vmul.f32 %v1998_v14, %v1984_v7 }
 0x627   : > { %v2001_v22 = vmul.f32 %v1999_v53, %v1985_v32 }
 0x629   : > { %v2018_v34 = vpack.c.bf16 %v2001_v22, %v2000_v33 }
 0x62b   : > { %2656 = vmatmul.mubr.bf16.vlgmr.msra.gmra.mrb[88].mxu0 %v2018_v34 }
 0x62c   : > { %2663 = vmatprep.mubr.msk.bf16.mxu0 %vm2789_vm0, %v2788_v3  ;;  %2660 = vmatpush3.bf16.msra.mxu0 %v2119_v19 }
 0x62d   : > { %2661 = vmatprep.subr.bf16.mxu0 %v2788_v3  ;;  %v2097_v3 = vld [vmem:[%s3905_s15] sm:$0x1] }
 0x630   : > { %2662 = vmatpush3.bf16.msra.mxu0 %v2120_v39 }
 0x6fe   : > { %v2068_v6 = vpop.f32.mrb[88].mxu0 }
 0x6ff   : > { %v2069_v36 = vadd.f32 %v2347_v23, %v2068_v6  ;;  %v2657_v2 = vpop.f32.mrb[89].mxu0 }
 0x700   : > { %v2071_v43 = vpop.f32.mrb[90].mxu0 }
 0x701   : > { %v2082_v59 = vmul.f32 %v2348_v13, %v2069_v36  ;;  %v2072_v21 = vadd.f32 %v2347_v23, %v2071_v43  ;;  %v2658_v62 = vpop.f32.mrb[91].mxu0 }
 0x703   : > { %v2084_v38 = vadd.f32 %v2082_v59, %v2989_v47  ;;  %v2083_v49 = vmul.f32 %v2348_v13, %v2072_v21 }
 0x705   : > { %v2085_v4 = vadd.f32 %v2083_v49, %v2991_v48  ;;  %v2086_v18 = vsel %vm667_vm2, %v2084_v38, 0.0 }
 0x707   : > { %v2087_v12 = vsel %vm667_vm2, %v2085_v4, 0.0 }
 0x708   : > { %v2088_v5 = vadd.f32 %v2087_v12, %v2086_v18 }
 0x70a   : > { %v2089_v16 = vrot.slane %v2088_v5, 4 }
 0x70c   : > { %v2090_v28 = vadd.f32 %v2089_v16, %v2088_v5 }
 0x70e   : > { %v2091_v24 = vrot.slane %v2090_v28, 2 }
 0x710   : > { %v2092_v29 = vadd.f32 %v2091_v24, %v2090_v28 }
 0x712   : > { %v2093_v45 = vrot.slane %v2092_v29, 1 }
 0x714   : > { %v2094_v55 = vadd.f32 %v2093_v45, %v2092_v29 }
 0x716   : > { %v2096_v0 = vmul.f32 0.0625, %v2094_v55 }
 0x718   : > { %v2099_v25 = vsel %vm667_vm2, %v2096_v0, 0.0 }
 0x719   : > { %2100 = vadd.xlane.f32.xlu0 %v2099_v25 }
 0x7a6   : > { %v2101_v30 = vpop.xlane.xlu0 %2100 }
 0x7a7   : > { %v2102_v47 = vmul.f32 0.03125, %v2101_v30 }
 0x7a9   : > { %v2103_v54 = vsub.f32 %v2096_v0, %v2102_v47 }
 0x7ab   : > { %v2104_v10 = vmul.f32 %v2103_v54, %v2103_v54 }
 0x7ad   : > { %v2105_v48 = vsel %vm667_vm2, %v2104_v10, 0.0 }
 0x7ae   : > { %2106 = vadd.xlane.f32.xlu1 %v2105_v48 }
 0x83b   : > { %v2107_v52 = vpop.xlane.xlu1 %2106 }
 0x83c   : > { %v2108_v35 = vmul.f32 0.03125, %v2107_v52 }
 0x83e   : > { %v2109_v26 = vadd.f32 1e-06, %v2108_v35 }
 0x840   : > { %2722 = vrsqrt.f32 %v2109_v26 }
 0x84a   : > { %v2723_v40 = vpop.eup %2722 }
 0x84b   : > { %v2111_v51 = vmul.f32 %v2723_v40, %v2103_v54 }
 0x84d   : > { %v2112_v11 = vmul.f32 %v2111_v51, %v2097_v3 }
 0x84f   : > { %v2113_v46 = vadd.f32 %v2112_v11, %v2098_v41 }
 0x851   : > { %v2118_v57 = vpack.c.bf16 %v2113_v46, %v2113_v46 }
 0x853   : > { %2664 = vmatmul.mubr.msk.bf16.vlgmr.msra.gmra.mrb[92].mxu0 %vm667_vm2, %v2118_v57 }
 0x926   : > { %v2159_v44 = vpop.f32.mrb[92].mxu0 }
 0x927   : > { %v2160_v58 = vadd.f32 %v2159_v44, %v2121_v1  ;;  %v2665_v27 = vpop.f32.mrb[93].mxu0 }
 0x928   : > { %v2162_v15 = vpop.f32.mrb[94].mxu0 }
 0x929   : > { %2165 = vst [vmem:[%s594_s27] sm:$0x1] %v2160_v58  ;;  %v2666_v50 = vpop.f32.mrb[95].mxu0 }
 0x92a   : > { %2737 = shalt.err (!%p2734_p3)
}
 0x92b   : > { %s2738_s20 = scalar_lea.hbm %s3848_s26, 16  ;;  %s2742_s0 = scalar_lea.hbm %s3909_s19, 32 }
 0x92c   : > { %p2739_p4 = scmp.ne.s32.totalorder %s3848_s26, %s2738_s20  ;;  %p2743_p9 = scmp.lt.u32.totalorder %s3848_s26, %s3909_s19 }
 0x92d   : > { %p2744_p10 = scmp.lt.u32.totalorder %s2742_s0, %s2738_s20  ;;  %p2746_p12 = scmp.lt.u32.totalorder %s2738_s20, %s3848_s26 }
 0x92e   : > { %p2740_p7 = pnand %p2739_p4, %p2929_p5 }
 0x92f   : > { %p2745_p11 = por %p2744_p10, %p2743_p9 }
 0x930   : > { %p2741_p8 = pneg %p2740_p7 }
 0x931   : > { %p2747_p13 = por %p2746_p12, %p2745_p11 }
 0x933   : > { %p2748_p0 = pnand %p2747_p13, %p2741_p8 }
 0x935   : > { %2751 = shalt.err (!%p2748_p0)
}
 0x936   : > { %2669 = dma.vmem_to_hbm [thread:$0]  (%p2929_p5), %s3850_s25, 16, %s3848_s26, %s2167_s2  }
 0x937 PF: > { %s3934_s1 = sld [smem:[#allocation5_spill]]  ;;  %p2675_p1 = scmp.ge.s32.totalorder %s2786_s21, 2 }
 0x939   : > { %p2672_p2 = pnand %p2675_p1, %p2933_p6 }
 0x93d   : > { %s2191_s23 = sand.u32 1, %s3934_s1  }
 0x93e   : > { %s2192_s27 = scalar_lea.sflag [#allocation3], %s2191_s23 }
 0x93f   : > { %2769 = dma.done.wait (!%p2672_p2), %s2192_s27, 16  }
 0x940   : > { %2771 = vsyncadd (!%p2672_p2), %s2192_s27, 4294967280  ;;  %s3936_s21 = sld [smem:[#allocation7_spill]]  ;;  %s3937_s20 = sld [smem:[#allocation6_spill]] }
 0x941   : > { %s3938_s22 = sld [smem:[#allocation8_spill]]  ;;  %s3939_s0 = smov %s2778_s30 }
 0x946   : > { %p29_p3 = scmp.ge.s32.totalorder %s3936_s21, 4   ;;  %s3940_s30 = smov %s3937_s20 }
 0x947   : > { %s3941_s20 = smov %s3938_s22 }
 0x948   :  { %31 = sbr.rel (!%p29_p3) target bundleno = 9 (0x9), region = 131 }
 0x94f   :  { %2196 = vsyncpa [#allocation3], 1 }
 0x950   :  { %2198 = vsyncpa [#allocation3 + $0x1], 1 }

</bundles_post_ra>
